<compile_context>
chip_gen: v7x
topology: tpu7x:2x2x1
jax: 0.10.0
libtpu: 0.0.40
codegen_flags: <defaults>
</compile_context>

<pallas_src>
import numpy as np
import jax
import jax.numpy as jnp
from jax.experimental import pallas as pl
from jax.experimental.pallas import tpu as pltpu


def _upsample_kernel(x_ref, w_ref, b_ref, d_ref, o_ref, y_ref):
    """One grid step: (Cin, TR, kW) packed-row slab -> (Cout, TR, 4kW) slab.

    x_ref: (1, Cin, TR, kW)   VMEM  input rows (lane-packed NCHW slab, native dtype)
    w_ref: (Cout, Cin)        SMEM  conv weights with frozen-BN scale folded in
    b_ref: (Cout,)            SMEM  frozen-BN bias
    d_ref: (kW, 4kW)          VMEM  one-hot duplication matrix (nearest 2x)
    o_ref: (1, Cout, TR, 4kW) VMEM  each 4W sub-block = [interleaved 2W row | same row]
    y_ref: (Cout*TR, kW)      VMEM  scratch holding all channels' activations
    """
    cin = x_ref.shape[1]
    cout = o_ref.shape[1]
    tr = o_ref.shape[2]

    x = x_ref[0].astype(jnp.float32)           # (Cin, TR, kW), cast in-kernel

    # 1x1 conv (Cin broadcast-FMAs on the VPU) + frozen-BN (folded) + LeakyReLU,
    # staged per channel into the (Cout*TR, kW) scratch for one batched matmul.
    for co in range(cout):
        acc = x[0] * w_ref[co, 0]
        for ci in range(1, cin):
            acc = acc + x[ci] * w_ref[co, ci]
        y = acc + b_ref[co]
        y_ref[co * tr:(co + 1) * tr, :] = jnp.maximum(y, 0.1 * y)   # LeakyReLU(0.1)

    # Nearest-2x upsample for every channel/row at once via one one-hot matmul.
    # HIGHEST precision keeps the 0/1-column product f32-exact through the MXU.
    z = jnp.dot(y_ref[...], d_ref[...],
                preferred_element_type=jnp.float32,
                precision=jax.lax.Precision.HIGHEST)   # (Cout*TR, 4kW)

    # Cout lane-dense (TR, 4kW) stores.  (TR is generally not a multiple of 8,
    # so a single reshape-store would need the same sublane shuffles anyway.)
    for co in range(cout):
        o_ref[0, co] = z[co * tr:(co + 1) * tr, :]


def _pick_lane_pack(H, W, max_kw=512):
    """k rows packed into the lane dim: smallest divisor of H giving kW that is a
    multiple of 128 (full lane tiles), else >= 128 lanes, else the largest that
    fits the cap (tiny images)."""
    divs = [d for d in range(1, H + 1) if H % d == 0 and d * W <= max_kw]
    if not divs:
        return 1                      # W already huge -> lane-dense as-is
    for d in divs:                    # ascending
        if (d * W) % 128 == 0:
            return d
    for d in divs:
        if d * W >= 128:
            return d
    return divs[-1]


def _pick_row_block(hp, out_row_bytes, target_bytes=2 << 20):
    """Packed rows per grid step sized from a ~2 MiB output-slab target.

    Returns (tr, pad_rows).  tr is either hp (full dim, always spec-legal) or a
    multiple of 8; if no multiple-of-8 divisor of hp fits the budget, the packed
    row axis is padded to a multiple of tr instead of silently taking the whole
    image."""
    max_rows = max(1, target_bytes // out_row_bytes)
    if hp <= max_rows:
        return hp, 0
    divs8 = [d for d in range(8, hp, 8) if hp % d == 0]
    fits = [d for d in divs8 if d <= max_rows]
    if fits:
        return max(fits), 0
    tr = max(8, (max_rows // 8) * 8)
    hp_pad = -(-hp // tr) * tr
    return tr, hp_pad - hp


def _num_tensorcores():
    """2 for megacore parts (v7x / v4), else 1.  Best-effort, never raises."""
    try:
        kind = jax.devices()[0].device_kind.lower()
    except Exception:
        return 1
    return 2 if ("v7" in kind or "v4" in kind) else 1


def upsample_forward(x_nchw, conv_w, bn_weight, bn_bias, bn_rm, bn_rv):
    """x_nchw: (N, Cin, H, W); conv_w: (Cout, Cin, 1, 1) (PyTorch layout)."""
    N, Cin, H, W = x_nchw.shape
    Cout = conv_w.shape[0]
    eps = 1e-5

    # Fold frozen-BN into the conv: y = (x@w)*scale + bias = x@(w*scale) + bias.
    scale = bn_weight.astype(jnp.float32) * jax.lax.rsqrt(bn_rv.astype(jnp.float32) + eps)
    b_eff = (bn_bias.astype(jnp.float32) - bn_rm.astype(jnp.float32) * scale)
    w_eff = (conv_w.reshape(Cout, Cin).astype(jnp.float32) * scale[:, None])

    # Lane packing: view k consecutive rows as one kW-wide row (metadata only).
    k = _pick_lane_pack(H, W)
    kw = k * W
    hp = H // k
    x_view = x_nchw.reshape(N, Cin, hp, kw)

    # One-hot duplication matrix: for packed row [y_h0 | y_h1 | ... | y_h(k-1)],
    # output column o (block j = o // 4W, p = o % 4W) takes input element
    # j*W + (p % 2W)//2, i.e. each 4W block = [2x-interleaved row h_j | same row].
    cols = np.arange(4 * kw)
    j = cols // (4 * W)
    p = cols % (4 * W)
    rows = j * W + (p % (2 * W)) // 2
    d4 = np.zeros((kw, 4 * kw), np.float32)
    d4[rows, cols] = 1.0
    d4 = jnp.asarray(d4)

    # Packed rows per step from the output-slab budget; pad ragged row counts.
    out_row_bytes = Cout * 4 * kw * 4
    tr, pad_rows = _pick_row_block(hp, out_row_bytes)
    if pad_rows:
        x_view = jnp.pad(x_view, ((0, 0), (0, 0), (0, pad_rows), (0, 0)))
    hp_pad = hp + pad_rows

    # Guarantee >= 2 parallel blocks for 2-TensorCore generations (v7x / v4).
    if N * (hp_pad // tr) < 2 and _num_tensorcores() >= 2:
        for d in range(tr - 8, 7, -8):        # largest mult-of-8 divisor < tr
            if tr % d == 0:
                tr = d
                break

    grid = (N, hp_pad // tr)

    # Explicit VMEM budget: double-buffered input/output slabs + dup matrix
    # + scratch + headroom; comfortably under v7x's 64 MiB physical VMEM.
    in_bytes = 2 * Cin * tr * kw * x_view.dtype.itemsize
    out_bytes = 2 * Cout * tr * 4 * kw * 4
    dup_bytes = 2 * kw * 4 * kw * 4
    scratch_bytes = Cout * tr * kw * 4
    vmem_limit = int(min(max(in_bytes + out_bytes + dup_bytes + scratch_bytes
                             + (4 << 20), 8 << 20), 48 << 20))

    out = pl.pallas_call(
        _upsample_kernel,
        out_shape=jax.ShapeDtypeStruct((N, Cout, hp_pad, 4 * kw), jnp.float32),
        grid=grid,
        in_specs=[
            pl.BlockSpec((1, Cin, tr, kw), lambda n, hb: (n, 0, hb, 0)),
            pl.BlockSpec(memory_space=pltpu.MemorySpace.SMEM),   # folded weights
            pl.BlockSpec(memory_space=pltpu.MemorySpace.SMEM),   # folded bias
            pl.BlockSpec((kw, 4 * kw), lambda n, hb: (0, 0)),    # dup matrix (resident)
        ],
        out_specs=pl.BlockSpec((1, Cout, tr, 4 * kw), lambda n, hb: (n, 0, hb, 0)),
        scratch_shapes=[pltpu.VMEM((Cout * tr, kw), jnp.float32)],
        compiler_params=pltpu.CompilerParams(
            dimension_semantics=("parallel", "parallel"),
            vmem_limit_bytes=vmem_limit,
        ),
    )(x_view, w_eff, b_eff, d4)

    if pad_rows:
        out = out[:, :, :hp, :]
    # Metadata-only reshape: (N, Cout, H/k, 4kW) is bit-identical row-major
    # layout to the final NCHW output (N, Cout, 2H, 2W).
    return out.reshape(N, Cout, 2 * H, 2 * W)


def _reference(x_nchw, conv_w, bn_weight, bn_bias, bn_rm, bn_rv):
    """Pure-JAX reference mirroring the PyTorch module semantics (NCHW)."""
    eps = 1e-5
    Cout, Cin = conv_w.shape[0], conv_w.shape[1]
    w_mat = conv_w.reshape(Cout, Cin)
    y = jnp.einsum("oc,nchw->nohw", w_mat, x_nchw,
                   precision=jax.lax.Precision.HIGHEST)
    scale = (bn_weight * jax.lax.rsqrt(bn_rv + eps)).reshape(1, Cout, 1, 1)
    bias = bn_bias.reshape(1, Cout, 1, 1) - bn_rm.reshape(1, Cout, 1, 1) * scale
    y = y * scale + bias
    y = jnp.where(y > 0, y, 0.1 * y)
    y = jnp.repeat(jnp.repeat(y, 2, axis=2), 2, axis=3)
    return y


if __name__ == "__main__":
    key = jax.random.PRNGKey(0)
    N, Cin, H, W = 2, 4, 16, 16
    Cout = 8

    k1, k2, k3, k4, k5, k6 = jax.random.split(key, 6)
    x = jax.random.normal(k1, (N, Cin, H, W), dtype=jnp.float32)

    # Conv2d(Cin, Cout, 1, bias=False) weight + non-trivial frozen-BN buffers.
    bound = 1.0 / np.sqrt(Cin)
    conv_w = jax.random.uniform(k2, (Cout, Cin, 1, 1), jnp.float32, -bound, bound)
    bn_weight = jax.random.uniform(k3, (Cout,), jnp.float32, 0.5, 1.5)
    bn_bias = jax.random.normal(k4, (Cout,), jnp.float32) * 0.1
    bn_rm = jax.random.normal(k5, (Cout,), jnp.float32) * 0.1
    bn_rv = jax.random.uniform(k6, (Cout,), jnp.float32, 0.5, 1.5)

    out = jax.block_until_ready(
        upsample_forward(x, conv_w, bn_weight, bn_bias, bn_rm, bn_rv))
    ref = jax.block_until_ready(
        _reference(x, conv_w, bn_weight, bn_bias, bn_rm, bn_rv))

    assert out.shape == (N, Cout, 2 * H, 2 * W), out.shape
    max_err = float(np.max(np.abs(np.asarray(out) - np.asarray(ref))))
    assert np.allclose(np.asarray(out), np.asarray(ref), atol=1e-5, rtol=1e-5), max_err

    print("KERNEL_OK")
</pallas_src>

<mosaic_0001>
module attributes {stable_mosaic.version = 11 : i64} {
  func.func @_upsample_kernel(%arg0: i32, %arg1: i32, %arg2: memref<1x4x2x128xf32, #tpu.memory_space<vmem>>, %arg3: memref<8x4xf32, #tpu.memory_space<smem>>, %arg4: memref<8xf32, #tpu.memory_space<smem>>, %arg5: memref<128x512xf32, #tpu.memory_space<vmem>>, %arg6: memref<1x8x2x512xf32, #tpu.memory_space<vmem>>, %arg7: memref<16x128xf32, #tpu.memory_space<vmem>>) attributes {dimension_semantics = [#tpu.dimension_semantics<parallel>, #tpu.dimension_semantics<parallel>], iteration_bounds = array<i64: 2, 1>, scalar_prefetch = 0 : i64, scratch_operands = 1 : i64, tpu.core_type = #tpu.core_type<tc>, window_params = [{transform_indices = @transform_0, window_bounds = array<i64: 1, 4, 2, 128>}, {transform_indices = @transform_1, window_bounds = array<i64: 8, 4>}, {transform_indices = @transform_2, window_bounds = array<i64: 8>}, {pipeline_mode = #tpu.pipeline_mode<synchronous>, transform_indices = @transform_3, window_bounds = array<i64: 128, 512>}, {transform_indices = @transform_4, window_bounds = array<i64: 1, 8, 2, 512>}]} {
    %c0 = arith.constant 0 : index
    %c0_0 = arith.constant 0 : index
    %c0_1 = arith.constant 0 : index
    %c0_2 = arith.constant 0 : index
    %0 = vector.load %arg2[%c0, %c0_0, %c0_1, %c0_2] : memref<1x4x2x128xf32, #tpu.memory_space<vmem>>, vector<1x4x2x128xf32>
    %1 = vector.shape_cast %0 : vector<1x4x2x128xf32> to vector<4x2x128xf32>
    %2 = vector.extract_strided_slice %1 {offsets = [0, 0, 0], sizes = [1, 2, 128], strides = [1, 1, 1]} : vector<4x2x128xf32> to vector<1x2x128xf32>
    %3 = vector.shape_cast %2 : vector<1x2x128xf32> to vector<2x128xf32>
    %c0_3 = arith.constant 0 : index
    %c0_4 = arith.constant 0 : index
    %4 = memref.load %arg3[%c0_3, %c0_4] : memref<8x4xf32, #tpu.memory_space<smem>>
    %5 = vector.broadcast %4 : f32 to vector<2x128xf32>
    %6 = arith.mulf %3, %5 : vector<2x128xf32>
    %7 = vector.extract_strided_slice %1 {offsets = [1, 0, 0], sizes = [1, 2, 128], strides = [1, 1, 1]} : vector<4x2x128xf32> to vector<1x2x128xf32>
    %8 = vector.shape_cast %7 : vector<1x2x128xf32> to vector<2x128xf32>
    %c0_5 = arith.constant 0 : index
    %c1 = arith.constant 1 : index
    %9 = memref.load %arg3[%c0_5, %c1] : memref<8x4xf32, #tpu.memory_space<smem>>
    %10 = vector.broadcast %9 : f32 to vector<2x128xf32>
    %11 = arith.mulf %8, %10 : vector<2x128xf32>
    %12 = arith.addf %6, %11 : vector<2x128xf32>
    %13 = vector.extract_strided_slice %1 {offsets = [2, 0, 0], sizes = [1, 2, 128], strides = [1, 1, 1]} : vector<4x2x128xf32> to vector<1x2x128xf32>
    %14 = vector.shape_cast %13 : vector<1x2x128xf32> to vector<2x128xf32>
    %c0_6 = arith.constant 0 : index
    %c2 = arith.constant 2 : index
    %15 = memref.load %arg3[%c0_6, %c2] : memref<8x4xf32, #tpu.memory_space<smem>>
    %16 = vector.broadcast %15 : f32 to vector<2x128xf32>
    %17 = arith.mulf %14, %16 : vector<2x128xf32>
    %18 = arith.addf %12, %17 : vector<2x128xf32>
    %19 = vector.extract_strided_slice %1 {offsets = [3, 0, 0], sizes = [1, 2, 128], strides = [1, 1, 1]} : vector<4x2x128xf32> to vector<1x2x128xf32>
    %20 = vector.shape_cast %19 : vector<1x2x128xf32> to vector<2x128xf32>
    %c0_7 = arith.constant 0 : index
    %c3 = arith.constant 3 : index
    %21 = memref.load %arg3[%c0_7, %c3] : memref<8x4xf32, #tpu.memory_space<smem>>
    %22 = vector.broadcast %21 : f32 to vector<2x128xf32>
    %23 = arith.mulf %20, %22 : vector<2x128xf32>
    %24 = arith.addf %18, %23 : vector<2x128xf32>
    %c0_8 = arith.constant 0 : index
    %25 = memref.load %arg4[%c0_8] : memref<8xf32, #tpu.memory_space<smem>>
    %26 = vector.broadcast %25 : f32 to vector<2x128xf32>
    %27 = arith.addf %24, %26 : vector<2x128xf32>
    %cst = arith.constant 1.000000e-01 : f32
    %28 = vector.broadcast %cst : f32 to vector<2x128xf32>
    %29 = arith.mulf %28, %27 : vector<2x128xf32>
    %30 = arith.maximumf %27, %29 : vector<2x128xf32>
    %c0_9 = arith.constant 0 : index
    %c0_10 = arith.constant 0 : index
    %31 = vector.load %arg7[%c0_9, %c0_10] : memref<16x128xf32, #tpu.memory_space<vmem>>, vector<2x128xf32>
    tpu.vector_store %arg7[%c0_9, %c0_10], %30 {strides = array<i32>} : memref<16x128xf32, #tpu.memory_space<vmem>>, vector<2x128xf32>,
    %32 = vector.extract_strided_slice %1 {offsets = [0, 0, 0], sizes = [1, 2, 128], strides = [1, 1, 1]} : vector<4x2x128xf32> to vector<1x2x128xf32>
    %33 = vector.shape_cast %32 : vector<1x2x128xf32> to vector<2x128xf32>
    %c1_11 = arith.constant 1 : index
    %c0_12 = arith.constant 0 : index
    %34 = memref.load %arg3[%c1_11, %c0_12] : memref<8x4xf32, #tpu.memory_space<smem>>
    %35 = vector.broadcast %34 : f32 to vector<2x128xf32>
    %36 = arith.mulf %33, %35 : vector<2x128xf32>
    %37 = vector.extract_strided_slice %1 {offsets = [1, 0, 0], sizes = [1, 2, 128], strides = [1, 1, 1]} : vector<4x2x128xf32> to vector<1x2x128xf32>
    %38 = vector.shape_cast %37 : vector<1x2x128xf32> to vector<2x128xf32>
    %c1_13 = arith.constant 1 : index
    %c1_14 = arith.constant 1 : index
    %39 = memref.load %arg3[%c1_13, %c1_14] : memref<8x4xf32, #tpu.memory_space<smem>>
    %40 = vector.broadcast %39 : f32 to vector<2x128xf32>
    %41 = arith.mulf %38, %40 : vector<2x128xf32>
    %42 = arith.addf %36, %41 : vector<2x128xf32>
    %43 = vector.extract_strided_slice %1 {offsets = [2, 0, 0], sizes = [1, 2, 128], strides = [1, 1, 1]} : vector<4x2x128xf32> to vector<1x2x128xf32>
    %44 = vector.shape_cast %43 : vector<1x2x128xf32> to vector<2x128xf32>
    %c1_15 = arith.constant 1 : index
    %c2_16 = arith.constant 2 : index
    %45 = memref.load %arg3[%c1_15, %c2_16] : memref<8x4xf32, #tpu.memory_space<smem>>
    %46 = vector.broadcast %45 : f32 to vector<2x128xf32>
    %47 = arith.mulf %44, %46 : vector<2x128xf32>
    %48 = arith.addf %42, %47 : vector<2x128xf32>
    %49 = vector.extract_strided_slice %1 {offsets = [3, 0, 0], sizes = [1, 2, 128], strides = [1, 1, 1]} : vector<4x2x128xf32> to vector<1x2x128xf32>
    %50 = vector.shape_cast %49 : vector<1x2x128xf32> to vector<2x128xf32>
    %c1_17 = arith.constant 1 : index
    %c3_18 = arith.constant 3 : index
    %51 = memref.load %arg3[%c1_17, %c3_18] : memref<8x4xf32, #tpu.memory_space<smem>>
    %52 = vector.broadcast %51 : f32 to vector<2x128xf32>
    %53 = arith.mulf %50, %52 : vector<2x128xf32>
    %54 = arith.addf %48, %53 : vector<2x128xf32>
    %c1_19 = arith.constant 1 : index
    %55 = memref.load %arg4[%c1_19] : memref<8xf32, #tpu.memory_space<smem>>
    %56 = vector.broadcast %55 : f32 to vector<2x128xf32>
    %57 = arith.addf %54, %56 : vector<2x128xf32>
    %cst_20 = arith.constant 1.000000e-01 : f32
    %58 = vector.broadcast %cst_20 : f32 to vector<2x128xf32>
    %59 = arith.mulf %58, %57 : vector<2x128xf32>
    %60 = arith.maximumf %57, %59 : vector<2x128xf32>
    %c2_21 = arith.constant 2 : index
    %c0_22 = arith.constant 0 : index
    %61 = vector.load %arg7[%c2_21, %c0_22] : memref<16x128xf32, #tpu.memory_space<vmem>>, vector<2x128xf32>
    tpu.vector_store %arg7[%c2_21, %c0_22], %60 {strides = array<i32>} : memref<16x128xf32, #tpu.memory_space<vmem>>, vector<2x128xf32>,
    %62 = vector.extract_strided_slice %1 {offsets = [0, 0, 0], sizes = [1, 2, 128], strides = [1, 1, 1]} : vector<4x2x128xf32> to vector<1x2x128xf32>
    %63 = vector.shape_cast %62 : vector<1x2x128xf32> to vector<2x128xf32>
    %c2_23 = arith.constant 2 : index
    %c0_24 = arith.constant 0 : index
    %64 = memref.load %arg3[%c2_23, %c0_24] : memref<8x4xf32, #tpu.memory_space<smem>>
    %65 = vector.broadcast %64 : f32 to vector<2x128xf32>
    %66 = arith.mulf %63, %65 : vector<2x128xf32>
    %67 = vector.extract_strided_slice %1 {offsets = [1, 0, 0], sizes = [1, 2, 128], strides = [1, 1, 1]} : vector<4x2x128xf32> to vector<1x2x128xf32>
    %68 = vector.shape_cast %67 : vector<1x2x128xf32> to vector<2x128xf32>
    %c2_25 = arith.constant 2 : index
    %c1_26 = arith.constant 1 : index
    %69 = memref.load %arg3[%c2_25, %c1_26] : memref<8x4xf32, #tpu.memory_space<smem>>
    %70 = vector.broadcast %69 : f32 to vector<2x128xf32>
    %71 = arith.mulf %68, %70 : vector<2x128xf32>
    %72 = arith.addf %66, %71 : vector<2x128xf32>
    %73 = vector.extract_strided_slice %1 {offsets = [2, 0, 0], sizes = [1, 2, 128], strides = [1, 1, 1]} : vector<4x2x128xf32> to vector<1x2x128xf32>
    %74 = vector.shape_cast %73 : vector<1x2x128xf32> to vector<2x128xf32>
    %c2_27 = arith.constant 2 : index
    %c2_28 = arith.constant 2 : index
    %75 = memref.load %arg3[%c2_27, %c2_28] : memref<8x4xf32, #tpu.memory_space<smem>>
    %76 = vector.broadcast %75 : f32 to vector<2x128xf32>
    %77 = arith.mulf %74, %76 : vector<2x128xf32>
    %78 = arith.addf %72, %77 : vector<2x128xf32>
    %79 = vector.extract_strided_slice %1 {offsets = [3, 0, 0], sizes = [1, 2, 128], strides = [1, 1, 1]} : vector<4x2x128xf32> to vector<1x2x128xf32>
    %80 = vector.shape_cast %79 : vector<1x2x128xf32> to vector<2x128xf32>
    %c2_29 = arith.constant 2 : index
    %c3_30 = arith.constant 3 : index
    %81 = memref.load %arg3[%c2_29, %c3_30] : memref<8x4xf32, #tpu.memory_space<smem>>
    %82 = vector.broadcast %81 : f32 to vector<2x128xf32>
    %83 = arith.mulf %80, %82 : vector<2x128xf32>
    %84 = arith.addf %78, %83 : vector<2x128xf32>
    %c2_31 = arith.constant 2 : index
    %85 = memref.load %arg4[%c2_31] : memref<8xf32, #tpu.memory_space<smem>>
    %86 = vector.broadcast %85 : f32 to vector<2x128xf32>
    %87 = arith.addf %84, %86 : vector<2x128xf32>
    %cst_32 = arith.constant 1.000000e-01 : f32
    %88 = vector.broadcast %cst_32 : f32 to vector<2x128xf32>
    %89 = arith.mulf %88, %87 : vector<2x128xf32>
    %90 = arith.maximumf %87, %89 : vector<2x128xf32>
    %c4 = arith.constant 4 : index
    %c0_33 = arith.constant 0 : index
    %91 = vector.load %arg7[%c4, %c0_33] : memref<16x128xf32, #tpu.memory_space<vmem>>, vector<2x128xf32>
    tpu.vector_store %arg7[%c4, %c0_33], %90 {strides = array<i32>} : memref<16x128xf32, #tpu.memory_space<vmem>>, vector<2x128xf32>,
    %92 = vector.extract_strided_slice %1 {offsets = [0, 0, 0], sizes = [1, 2, 128], strides = [1, 1, 1]} : vector<4x2x128xf32> to vector<1x2x128xf32>
    %93 = vector.shape_cast %92 : vector<1x2x128xf32> to vector<2x128xf32>
    %c3_34 = arith.constant 3 : index
    %c0_35 = arith.constant 0 : index
    %94 = memref.load %arg3[%c3_34, %c0_35] : memref<8x4xf32, #tpu.memory_space<smem>>
    %95 = vector.broadcast %94 : f32 to vector<2x128xf32>
    %96 = arith.mulf %93, %95 : vector<2x128xf32>
    %97 = vector.extract_strided_slice %1 {offsets = [1, 0, 0], sizes = [1, 2, 128], strides = [1, 1, 1]} : vector<4x2x128xf32> to vector<1x2x128xf32>
    %98 = vector.shape_cast %97 : vector<1x2x128xf32> to vector<2x128xf32>
    %c3_36 = arith.constant 3 : index
    %c1_37 = arith.constant 1 : index
    %99 = memref.load %arg3[%c3_36, %c1_37] : memref<8x4xf32, #tpu.memory_space<smem>>
    %100 = vector.broadcast %99 : f32 to vector<2x128xf32>
    %101 = arith.mulf %98, %100 : vector<2x128xf32>
    %102 = arith.addf %96, %101 : vector<2x128xf32>
    %103 = vector.extract_strided_slice %1 {offsets = [2, 0, 0], sizes = [1, 2, 128], strides = [1, 1, 1]} : vector<4x2x128xf32> to vector<1x2x128xf32>
    %104 = vector.shape_cast %103 : vector<1x2x128xf32> to vector<2x128xf32>
    %c3_38 = arith.constant 3 : index
    %c2_39 = arith.constant 2 : index
    %105 = memref.load %arg3[%c3_38, %c2_39] : memref<8x4xf32, #tpu.memory_space<smem>>
    %106 = vector.broadcast %105 : f32 to vector<2x128xf32>
    %107 = arith.mulf %104, %106 : vector<2x128xf32>
    %108 = arith.addf %102, %107 : vector<2x128xf32>
    %109 = vector.extract_strided_slice %1 {offsets = [3, 0, 0], sizes = [1, 2, 128], strides = [1, 1, 1]} : vector<4x2x128xf32> to vector<1x2x128xf32>
    %110 = vector.shape_cast %109 : vector<1x2x128xf32> to vector<2x128xf32>
    %c3_40 = arith.constant 3 : index
    %c3_41 = arith.constant 3 : index
    %111 = memref.load %arg3[%c3_40, %c3_41] : memref<8x4xf32, #tpu.memory_space<smem>>
    %112 = vector.broadcast %111 : f32 to vector<2x128xf32>
    %113 = arith.mulf %110, %112 : vector<2x128xf32>
    %114 = arith.addf %108, %113 : vector<2x128xf32>
    %c3_42 = arith.constant 3 : index
    %115 = memref.load %arg4[%c3_42] : memref<8xf32, #tpu.memory_space<smem>>
    %116 = vector.broadcast %115 : f32 to vector<2x128xf32>
    %117 = arith.addf %114, %116 : vector<2x128xf32>
    %cst_43 = arith.constant 1.000000e-01 : f32
    %118 = vector.broadcast %cst_43 : f32 to vector<2x128xf32>
    %119 = arith.mulf %118, %117 : vector<2x128xf32>
    %120 = arith.maximumf %117, %119 : vector<2x128xf32>
    %c6 = arith.constant 6 : index
    %c0_44 = arith.constant 0 : index
    %121 = vector.load %arg7[%c6, %c0_44] : memref<16x128xf32, #tpu.memory_space<vmem>>, vector<2x128xf32>
    tpu.vector_store %arg7[%c6, %c0_44], %120 {strides = array<i32>} : memref<16x128xf32, #tpu.memory_space<vmem>>, vector<2x128xf32>,
    %122 = vector.extract_strided_slice %1 {offsets = [0, 0, 0], sizes = [1, 2, 128], strides = [1, 1, 1]} : vector<4x2x128xf32> to vector<1x2x128xf32>
    %123 = vector.shape_cast %122 : vector<1x2x128xf32> to vector<2x128xf32>
    %c4_45 = arith.constant 4 : index
    %c0_46 = arith.constant 0 : index
    %124 = memref.load %arg3[%c4_45, %c0_46] : memref<8x4xf32, #tpu.memory_space<smem>>
    %125 = vector.broadcast %124 : f32 to vector<2x128xf32>
    %126 = arith.mulf %123, %125 : vector<2x128xf32>
    %127 = vector.extract_strided_slice %1 {offsets = [1, 0, 0], sizes = [1, 2, 128], strides = [1, 1, 1]} : vector<4x2x128xf32> to vector<1x2x128xf32>
    %128 = vector.shape_cast %127 : vector<1x2x128xf32> to vector<2x128xf32>
    %c4_47 = arith.constant 4 : index
    %c1_48 = arith.constant 1 : index
    %129 = memref.load %arg3[%c4_47, %c1_48] : memref<8x4xf32, #tpu.memory_space<smem>>
    %130 = vector.broadcast %129 : f32 to vector<2x128xf32>
    %131 = arith.mulf %128, %130 : vector<2x128xf32>
    %132 = arith.addf %126, %131 : vector<2x128xf32>
    %133 = vector.extract_strided_slice %1 {offsets = [2, 0, 0], sizes = [1, 2, 128], strides = [1, 1, 1]} : vector<4x2x128xf32> to vector<1x2x128xf32>
    %134 = vector.shape_cast %133 : vector<1x2x128xf32> to vector<2x128xf32>
    %c4_49 = arith.constant 4 : index
    %c2_50 = arith.constant 2 : index
    %135 = memref.load %arg3[%c4_49, %c2_50] : memref<8x4xf32, #tpu.memory_space<smem>>
    %136 = vector.broadcast %135 : f32 to vector<2x128xf32>
    %137 = arith.mulf %134, %136 : vector<2x128xf32>
    %138 = arith.addf %132, %137 : vector<2x128xf32>
    %139 = vector.extract_strided_slice %1 {offsets = [3, 0, 0], sizes = [1, 2, 128], strides = [1, 1, 1]} : vector<4x2x128xf32> to vector<1x2x128xf32>
    %140 = vector.shape_cast %139 : vector<1x2x128xf32> to vector<2x128xf32>
    %c4_51 = arith.constant 4 : index
    %c3_52 = arith.constant 3 : index
    %141 = memref.load %arg3[%c4_51, %c3_52] : memref<8x4xf32, #tpu.memory_space<smem>>
    %142 = vector.broadcast %141 : f32 to vector<2x128xf32>
    %143 = arith.mulf %140, %142 : vector<2x128xf32>
    %144 = arith.addf %138, %143 : vector<2x128xf32>
    %c4_53 = arith.constant 4 : index
    %145 = memref.load %arg4[%c4_53] : memref<8xf32, #tpu.memory_space<smem>>
    %146 = vector.broadcast %145 : f32 to vector<2x128xf32>
    %147 = arith.addf %144, %146 : vector<2x128xf32>
    %cst_54 = arith.constant 1.000000e-01 : f32
    %148 = vector.broadcast %cst_54 : f32 to vector<2x128xf32>
    %149 = arith.mulf %148, %147 : vector<2x128xf32>
    %150 = arith.maximumf %147, %149 : vector<2x128xf32>
    %c8 = arith.constant 8 : index
    %c0_55 = arith.constant 0 : index
    %151 = vector.load %arg7[%c8, %c0_55] : memref<16x128xf32, #tpu.memory_space<vmem>>, vector<2x128xf32>
    tpu.vector_store %arg7[%c8, %c0_55], %150 {strides = array<i32>} : memref<16x128xf32, #tpu.memory_space<vmem>>, vector<2x128xf32>,
    %152 = vector.extract_strided_slice %1 {offsets = [0, 0, 0], sizes = [1, 2, 128], strides = [1, 1, 1]} : vector<4x2x128xf32> to vector<1x2x128xf32>
    %153 = vector.shape_cast %152 : vector<1x2x128xf32> to vector<2x128xf32>
    %c5 = arith.constant 5 : index
    %c0_56 = arith.constant 0 : index
    %154 = memref.load %arg3[%c5, %c0_56] : memref<8x4xf32, #tpu.memory_space<smem>>
    %155 = vector.broadcast %154 : f32 to vector<2x128xf32>
    %156 = arith.mulf %153, %155 : vector<2x128xf32>
    %157 = vector.extract_strided_slice %1 {offsets = [1, 0, 0], sizes = [1, 2, 128], strides = [1, 1, 1]} : vector<4x2x128xf32> to vector<1x2x128xf32>
    %158 = vector.shape_cast %157 : vector<1x2x128xf32> to vector<2x128xf32>
    %c5_57 = arith.constant 5 : index
    %c1_58 = arith.constant 1 : index
    %159 = memref.load %arg3[%c5_57, %c1_58] : memref<8x4xf32, #tpu.memory_space<smem>>
    %160 = vector.broadcast %159 : f32 to vector<2x128xf32>
    %161 = arith.mulf %158, %160 : vector<2x128xf32>
    %162 = arith.addf %156, %161 : vector<2x128xf32>
    %163 = vector.extract_strided_slice %1 {offsets = [2, 0, 0], sizes = [1, 2, 128], strides = [1, 1, 1]} : vector<4x2x128xf32> to vector<1x2x128xf32>
    %164 = vector.shape_cast %163 : vector<1x2x128xf32> to vector<2x128xf32>
    %c5_59 = arith.constant 5 : index
    %c2_60 = arith.constant 2 : index
    %165 = memref.load %arg3[%c5_59, %c2_60] : memref<8x4xf32, #tpu.memory_space<smem>>
    %166 = vector.broadcast %165 : f32 to vector<2x128xf32>
    %167 = arith.mulf %164, %166 : vector<2x128xf32>
    %168 = arith.addf %162, %167 : vector<2x128xf32>
    %169 = vector.extract_strided_slice %1 {offsets = [3, 0, 0], sizes = [1, 2, 128], strides = [1, 1, 1]} : vector<4x2x128xf32> to vector<1x2x128xf32>
    %170 = vector.shape_cast %169 : vector<1x2x128xf32> to vector<2x128xf32>
    %c5_61 = arith.constant 5 : index
    %c3_62 = arith.constant 3 : index
    %171 = memref.load %arg3[%c5_61, %c3_62] : memref<8x4xf32, #tpu.memory_space<smem>>
    %172 = vector.broadcast %171 : f32 to vector<2x128xf32>
    %173 = arith.mulf %170, %172 : vector<2x128xf32>
    %174 = arith.addf %168, %173 : vector<2x128xf32>
    %c5_63 = arith.constant 5 : index
    %175 = memref.load %arg4[%c5_63] : memref<8xf32, #tpu.memory_space<smem>>
    %176 = vector.broadcast %175 : f32 to vector<2x128xf32>
    %177 = arith.addf %174, %176 : vector<2x128xf32>
    %cst_64 = arith.constant 1.000000e-01 : f32
    %178 = vector.broadcast %cst_64 : f32 to vector<2x128xf32>
    %179 = arith.mulf %178, %177 : vector<2x128xf32>
    %180 = arith.maximumf %177, %179 : vector<2x128xf32>
    %c10 = arith.constant 10 : index
    %c0_65 = arith.constant 0 : index
    %181 = vector.load %arg7[%c10, %c0_65] : memref<16x128xf32, #tpu.memory_space<vmem>>, vector<2x128xf32>
    tpu.vector_store %arg7[%c10, %c0_65], %180 {strides = array<i32>} : memref<16x128xf32, #tpu.memory_space<vmem>>, vector<2x128xf32>,
    %182 = vector.extract_strided_slice %1 {offsets = [0, 0, 0], sizes = [1, 2, 128], strides = [1, 1, 1]} : vector<4x2x128xf32> to vector<1x2x128xf32>
    %183 = vector.shape_cast %182 : vector<1x2x128xf32> to vector<2x128xf32>
    %c6_66 = arith.constant 6 : index
    %c0_67 = arith.constant 0 : index
    %184 = memref.load %arg3[%c6_66, %c0_67] : memref<8x4xf32, #tpu.memory_space<smem>>
    %185 = vector.broadcast %184 : f32 to vector<2x128xf32>
    %186 = arith.mulf %183, %185 : vector<2x128xf32>
    %187 = vector.extract_strided_slice %1 {offsets = [1, 0, 0], sizes = [1, 2, 128], strides = [1, 1, 1]} : vector<4x2x128xf32> to vector<1x2x128xf32>
    %188 = vector.shape_cast %187 : vector<1x2x128xf32> to vector<2x128xf32>
    %c6_68 = arith.constant 6 : index
    %c1_69 = arith.constant 1 : index
    %189 = memref.load %arg3[%c6_68, %c1_69] : memref<8x4xf32, #tpu.memory_space<smem>>
    %190 = vector.broadcast %189 : f32 to vector<2x128xf32>
    %191 = arith.mulf %188, %190 : vector<2x128xf32>
    %192 = arith.addf %186, %191 : vector<2x128xf32>
    %193 = vector.extract_strided_slice %1 {offsets = [2, 0, 0], sizes = [1, 2, 128], strides = [1, 1, 1]} : vector<4x2x128xf32> to vector<1x2x128xf32>
    %194 = vector.shape_cast %193 : vector<1x2x128xf32> to vector<2x128xf32>
    %c6_70 = arith.constant 6 : index
    %c2_71 = arith.constant 2 : index
    %195 = memref.load %arg3[%c6_70, %c2_71] : memref<8x4xf32, #tpu.memory_space<smem>>
    %196 = vector.broadcast %195 : f32 to vector<2x128xf32>
    %197 = arith.mulf %194, %196 : vector<2x128xf32>
    %198 = arith.addf %192, %197 : vector<2x128xf32>
    %199 = vector.extract_strided_slice %1 {offsets = [3, 0, 0], sizes = [1, 2, 128], strides = [1, 1, 1]} : vector<4x2x128xf32> to vector<1x2x128xf32>
    %200 = vector.shape_cast %199 : vector<1x2x128xf32> to vector<2x128xf32>
    %c6_72 = arith.constant 6 : index
    %c3_73 = arith.constant 3 : index
    %201 = memref.load %arg3[%c6_72, %c3_73] : memref<8x4xf32, #tpu.memory_space<smem>>
    %202 = vector.broadcast %201 : f32 to vector<2x128xf32>
    %203 = arith.mulf %200, %202 : vector<2x128xf32>
    %204 = arith.addf %198, %203 : vector<2x128xf32>
    %c6_74 = arith.constant 6 : index
    %205 = memref.load %arg4[%c6_74] : memref<8xf32, #tpu.memory_space<smem>>
    %206 = vector.broadcast %205 : f32 to vector<2x128xf32>
    %207 = arith.addf %204, %206 : vector<2x128xf32>
    %cst_75 = arith.constant 1.000000e-01 : f32
    %208 = vector.broadcast %cst_75 : f32 to vector<2x128xf32>
    %209 = arith.mulf %208, %207 : vector<2x128xf32>
    %210 = arith.maximumf %207, %209 : vector<2x128xf32>
    %c12 = arith.constant 12 : index
    %c0_76 = arith.constant 0 : index
    %211 = vector.load %arg7[%c12, %c0_76] : memref<16x128xf32, #tpu.memory_space<vmem>>, vector<2x128xf32>
    tpu.vector_store %arg7[%c12, %c0_76], %210 {strides = array<i32>} : memref<16x128xf32, #tpu.memory_space<vmem>>, vector<2x128xf32>,
    %212 = vector.extract_strided_slice %1 {offsets = [0, 0, 0], sizes = [1, 2, 128], strides = [1, 1, 1]} : vector<4x2x128xf32> to vector<1x2x128xf32>
    %213 = vector.shape_cast %212 : vector<1x2x128xf32> to vector<2x128xf32>
    %c7 = arith.constant 7 : index
    %c0_77 = arith.constant 0 : index
    %214 = memref.load %arg3[%c7, %c0_77] : memref<8x4xf32, #tpu.memory_space<smem>>
    %215 = vector.broadcast %214 : f32 to vector<2x128xf32>
    %216 = arith.mulf %213, %215 : vector<2x128xf32>
    %217 = vector.extract_strided_slice %1 {offsets = [1, 0, 0], sizes = [1, 2, 128], strides = [1, 1, 1]} : vector<4x2x128xf32> to vector<1x2x128xf32>
    %218 = vector.shape_cast %217 : vector<1x2x128xf32> to vector<2x128xf32>
    %c7_78 = arith.constant 7 : index
    %c1_79 = arith.constant 1 : index
    %219 = memref.load %arg3[%c7_78, %c1_79] : memref<8x4xf32, #tpu.memory_space<smem>>
    %220 = vector.broadcast %219 : f32 to vector<2x128xf32>
    %221 = arith.mulf %218, %220 : vector<2x128xf32>
    %222 = arith.addf %216, %221 : vector<2x128xf32>
    %223 = vector.extract_strided_slice %1 {offsets = [2, 0, 0], sizes = [1, 2, 128], strides = [1, 1, 1]} : vector<4x2x128xf32> to vector<1x2x128xf32>
    %224 = vector.shape_cast %223 : vector<1x2x128xf32> to vector<2x128xf32>
    %c7_80 = arith.constant 7 : index
    %c2_81 = arith.constant 2 : index
    %225 = memref.load %arg3[%c7_80, %c2_81] : memref<8x4xf32, #tpu.memory_space<smem>>
    %226 = vector.broadcast %225 : f32 to vector<2x128xf32>
    %227 = arith.mulf %224, %226 : vector<2x128xf32>
    %228 = arith.addf %222, %227 : vector<2x128xf32>
    %229 = vector.extract_strided_slice %1 {offsets = [3, 0, 0], sizes = [1, 2, 128], strides = [1, 1, 1]} : vector<4x2x128xf32> to vector<1x2x128xf32>
    %230 = vector.shape_cast %229 : vector<1x2x128xf32> to vector<2x128xf32>
    %c7_82 = arith.constant 7 : index
    %c3_83 = arith.constant 3 : index
    %231 = memref.load %arg3[%c7_82, %c3_83] : memref<8x4xf32, #tpu.memory_space<smem>>
    %232 = vector.broadcast %231 : f32 to vector<2x128xf32>
    %233 = arith.mulf %230, %232 : vector<2x128xf32>
    %234 = arith.addf %228, %233 : vector<2x128xf32>
    %c7_84 = arith.constant 7 : index
    %235 = memref.load %arg4[%c7_84] : memref<8xf32, #tpu.memory_space<smem>>
    %236 = vector.broadcast %235 : f32 to vector<2x128xf32>
    %237 = arith.addf %234, %236 : vector<2x128xf32>
    %cst_85 = arith.constant 1.000000e-01 : f32
    %238 = vector.broadcast %cst_85 : f32 to vector<2x128xf32>
    %239 = arith.mulf %238, %237 : vector<2x128xf32>
    %240 = arith.maximumf %237, %239 : vector<2x128xf32>
    %c14 = arith.constant 14 : index
    %c0_86 = arith.constant 0 : index
    %241 = vector.load %arg7[%c14, %c0_86] : memref<16x128xf32, #tpu.memory_space<vmem>>, vector<2x128xf32>
    tpu.vector_store %arg7[%c14, %c0_86], %240 {strides = array<i32>} : memref<16x128xf32, #tpu.memory_space<vmem>>, vector<2x128xf32>,
    %c0_87 = arith.constant 0 : index
    %c0_88 = arith.constant 0 : index
    %242 = vector.load %arg7[%c0_87, %c0_88] : memref<16x128xf32, #tpu.memory_space<vmem>>, vector<16x128xf32>
    %c0_89 = arith.constant 0 : index
    %c0_90 = arith.constant 0 : index
    %243 = vector.load %arg5[%c0_89, %c0_90] : memref<128x512xf32, #tpu.memory_space<vmem>>, vector<128x512xf32>
    %cst_91 = arith.constant dense<0.000000e+00> : vector<16x512xf32>
    %244 = tpu.matmul %242, %243, %cst_91 {dimension_numbers = #tpu.dot_dimension_numbers<[1], [0], [0], [1], [0, 0, 1, 1], [], []>, precision = #tpu.contract_precision<fp32>} : vector<16x128xf32>, vector<128x512xf32>, vector<16x512xf32> -> vector<16x512xf32>
    %245 = vector.extract_strided_slice %244 {offsets = [0, 0], sizes = [2, 512], strides = [1, 1]} : vector<16x512xf32> to vector<2x512xf32>
    %c0_92 = arith.constant 0 : index
    %c0_93 = arith.constant 0 : index
    %c0_94 = arith.constant 0 : index
    %c0_95 = arith.constant 0 : index
    %246 = vector.load %arg6[%c0_92, %c0_93, %c0_94, %c0_95] : memref<1x8x2x512xf32, #tpu.memory_space<vmem>>, vector<1x1x2x512xf32>
    %247 = vector.shape_cast %246 : vector<1x1x2x512xf32> to vector<2x512xf32>
    %248 = vector.shape_cast %245 : vector<2x512xf32> to vector<1x1x2x512xf32>
    tpu.vector_store %arg6[%c0_92, %c0_93, %c0_94, %c0_95], %248 {strides = array<i32>} : memref<1x8x2x512xf32, #tpu.memory_space<vmem>>, vector<1x1x2x512xf32>,
    %249 = vector.extract_strided_slice %244 {offsets = [2, 0], sizes = [2, 512], strides = [1, 1]} : vector<16x512xf32> to vector<2x512xf32>
    %c0_96 = arith.constant 0 : index
    %c1_97 = arith.constant 1 : index
    %c0_98 = arith.constant 0 : index
    %c0_99 = arith.constant 0 : index
    %250 = vector.load %arg6[%c0_96, %c1_97, %c0_98, %c0_99] : memref<1x8x2x512xf32, #tpu.memory_space<vmem>>, vector<1x1x2x512xf32>
    %251 = vector.shape_cast %250 : vector<1x1x2x512xf32> to vector<2x512xf32>
    %252 = vector.shape_cast %249 : vector<2x512xf32> to vector<1x1x2x512xf32>
    tpu.vector_store %arg6[%c0_96, %c1_97, %c0_98, %c0_99], %252 {strides = array<i32>} : memref<1x8x2x512xf32, #tpu.memory_space<vmem>>, vector<1x1x2x512xf32>,
    %253 = vector.extract_strided_slice %244 {offsets = [4, 0], sizes = [2, 512], strides = [1, 1]} : vector<16x512xf32> to vector<2x512xf32>
    %c0_100 = arith.constant 0 : index
    %c2_101 = arith.constant 2 : index
    %c0_102 = arith.constant 0 : index
    %c0_103 = arith.constant 0 : index
    %254 = vector.load %arg6[%c0_100, %c2_101, %c0_102, %c0_103] : memref<1x8x2x512xf32, #tpu.memory_space<vmem>>, vector<1x1x2x512xf32>
    %255 = vector.shape_cast %254 : vector<1x1x2x512xf32> to vector<2x512xf32>
    %256 = vector.shape_cast %253 : vector<2x512xf32> to vector<1x1x2x512xf32>
    tpu.vector_store %arg6[%c0_100, %c2_101, %c0_102, %c0_103], %256 {strides = array<i32>} : memref<1x8x2x512xf32, #tpu.memory_space<vmem>>, vector<1x1x2x512xf32>,
    %257 = vector.extract_strided_slice %244 {offsets = [6, 0], sizes = [2, 512], strides = [1, 1]} : vector<16x512xf32> to vector<2x512xf32>
    %c0_104 = arith.constant 0 : index
    %c3_105 = arith.constant 3 : index
    %c0_106 = arith.constant 0 : index
    %c0_107 = arith.constant 0 : index
    %258 = vector.load %arg6[%c0_104, %c3_105, %c0_106, %c0_107] : memref<1x8x2x512xf32, #tpu.memory_space<vmem>>, vector<1x1x2x512xf32>
    %259 = vector.shape_cast %258 : vector<1x1x2x512xf32> to vector<2x512xf32>
    %260 = vector.shape_cast %257 : vector<2x512xf32> to vector<1x1x2x512xf32>
    tpu.vector_store %arg6[%c0_104, %c3_105, %c0_106, %c0_107], %260 {strides = array<i32>} : memref<1x8x2x512xf32, #tpu.memory_space<vmem>>, vector<1x1x2x512xf32>,
    %261 = vector.extract_strided_slice %244 {offsets = [8, 0], sizes = [2, 512], strides = [1, 1]} : vector<16x512xf32> to vector<2x512xf32>
    %c0_108 = arith.constant 0 : index
    %c4_109 = arith.constant 4 : index
    %c0_110 = arith.constant 0 : index
    %c0_111 = arith.constant 0 : index
    %262 = vector.load %arg6[%c0_108, %c4_109, %c0_110, %c0_111] : memref<1x8x2x512xf32, #tpu.memory_space<vmem>>, vector<1x1x2x512xf32>
    %263 = vector.shape_cast %262 : vector<1x1x2x512xf32> to vector<2x512xf32>
    %264 = vector.shape_cast %261 : vector<2x512xf32> to vector<1x1x2x512xf32>
    tpu.vector_store %arg6[%c0_108, %c4_109, %c0_110, %c0_111], %264 {strides = array<i32>} : memref<1x8x2x512xf32, #tpu.memory_space<vmem>>, vector<1x1x2x512xf32>,
    %265 = vector.extract_strided_slice %244 {offsets = [10, 0], sizes = [2, 512], strides = [1, 1]} : vector<16x512xf32> to vector<2x512xf32>
    %c0_112 = arith.constant 0 : index
    %c5_113 = arith.constant 5 : index
    %c0_114 = arith.constant 0 : index
    %c0_115 = arith.constant 0 : index
    %266 = vector.load %arg6[%c0_112, %c5_113, %c0_114, %c0_115] : memref<1x8x2x512xf32, #tpu.memory_space<vmem>>, vector<1x1x2x512xf32>
    %267 = vector.shape_cast %266 : vector<1x1x2x512xf32> to vector<2x512xf32>
    %268 = vector.shape_cast %265 : vector<2x512xf32> to vector<1x1x2x512xf32>
    tpu.vector_store %arg6[%c0_112, %c5_113, %c0_114, %c0_115], %268 {strides = array<i32>} : memref<1x8x2x512xf32, #tpu.memory_space<vmem>>, vector<1x1x2x512xf32>,
    %269 = vector.extract_strided_slice %244 {offsets = [12, 0], sizes = [2, 512], strides = [1, 1]} : vector<16x512xf32> to vector<2x512xf32>
    %c0_116 = arith.constant 0 : index
    %c6_117 = arith.constant 6 : index
    %c0_118 = arith.constant 0 : index
    %c0_119 = arith.constant 0 : index
    %270 = vector.load %arg6[%c0_116, %c6_117, %c0_118, %c0_119] : memref<1x8x2x512xf32, #tpu.memory_space<vmem>>, vector<1x1x2x512xf32>
    %271 = vector.shape_cast %270 : vector<1x1x2x512xf32> to vector<2x512xf32>
    %272 = vector.shape_cast %269 : vector<2x512xf32> to vector<1x1x2x512xf32>
    tpu.vector_store %arg6[%c0_116, %c6_117, %c0_118, %c0_119], %272 {strides = array<i32>} : memref<1x8x2x512xf32, #tpu.memory_space<vmem>>, vector<1x1x2x512xf32>,
    %273 = vector.extract_strided_slice %244 {offsets = [14, 0], sizes = [2, 512], strides = [1, 1]} : vector<16x512xf32> to vector<2x512xf32>
    %c0_120 = arith.constant 0 : index
    %c7_121 = arith.constant 7 : index
    %c0_122 = arith.constant 0 : index
    %c0_123 = arith.constant 0 : index
    %274 = vector.load %arg6[%c0_120, %c7_121, %c0_122, %c0_123] : memref<1x8x2x512xf32, #tpu.memory_space<vmem>>, vector<1x1x2x512xf32>
    %275 = vector.shape_cast %274 : vector<1x1x2x512xf32> to vector<2x512xf32>
    %276 = vector.shape_cast %273 : vector<2x512xf32> to vector<1x1x2x512xf32>
    tpu.vector_store %arg6[%c0_120, %c7_121, %c0_122, %c0_123], %276 {strides = array<i32>} : memref<1x8x2x512xf32, #tpu.memory_space<vmem>>, vector<1x1x2x512xf32>,
    return
  }
  func.func @transform_0(%arg0: i32, %arg1: i32) -> (i32, i32, i32, i32) {
    %c0_i32 = arith.constant 0 : i32
    %c0_i32_0 = arith.constant 0 : i32
    %c0_i32_1 = arith.constant 0 : i32
    return %arg0, %c0_i32, %arg1, %c0_i32_0 : i32, i32, i32, i32
  }
  func.func @transform_1(%arg0: i32, %arg1: i32) -> (i32, i32) {
    %c0_i32 = arith.constant 0 : i32
    %c0_i32_0 = arith.constant 0 : i32
    %c0_i32_1 = arith.constant 0 : i32
    return %c0_i32, %c0_i32_0 : i32, i32
  }
  func.func @transform_2(%arg0: i32, %arg1: i32) -> i32 {
    %c0_i32 = arith.constant 0 : i32
    %c0_i32_0 = arith.constant 0 : i32
    return %c0_i32 : i32
  }
  func.func @transform_3(%arg0: i32, %arg1: i32) -> (i32, i32) {
    %c0_i32 = arith.constant 0 : i32
    %c0_i32_0 = arith.constant 0 : i32
    %c0_i32_1 = arith.constant 0 : i32
    return %c0_i32, %c0_i32_0 : i32, i32
  }
  func.func @transform_4(%arg0: i32, %arg1: i32) -> (i32, i32, i32, i32) {
    %c0_i32 = arith.constant 0 : i32
    %c0_i32_0 = arith.constant 0 : i32
    %c0_i32_1 = arith.constant 0 : i32
    return %arg0, %c0_i32, %arg1, %c0_i32_0 : i32, i32, i32, i32
  }
}

</mosaic_0001>

<bundles_post_ra>
// kernel: tpu_custom_call.1
= control target key start
LH: loop header
LB: loop body
LE: loop exit
PB: predicated region body
PF: predicated region fallthrough
CT: control target
= control target key end

     0   :  { %9 = vsyncpa [#allocation4], 0  ;;  %s4770_s0 = inlined_call_operand.hbm [shape: f32[2,4,2,128], index: 0, kind: input, shape index: {}]   ;;  %s4771_s1 = inlined_call_operand.vmem [shape: f32[8,4], index: 1, kind: input, shape index: {}]   ;;  %s4772_s2 = inlined_call_operand.vmem [shape: f32[8], index: 2, kind: input, shape index: {}]   ;;  %s4773_s3 = inlined_call_operand.hbm [shape: f32[128,512], index: 3, kind: input, shape index: {}]   ;;  %s4774_s4 = inlined_call_operand.hbm [shape: f32[2,8,2,512], index: 4, kind: output, shape index: {}]  }
   0x1   :  { %11 = vsyncpa [#allocation4 + $0x1], 0 }
   0x2   :  { %12 = vsyncpa [#allocation6], 0 }
   0x3   :  { %13 = vsyncpa [#allocation9], 0 }
   0x4   :  { %14 = vsyncpa [#allocation11], 0 }
   0x5   :  { %15 = vsyncpa [#allocation5], 0 }
   0x6   :  { %17 = vsyncpa [#allocation5 + $0x1], 0  ;;  %s3371_s15 = smov 0   ;;  %s3373_s16 = smov 0  }
   0x7   :  { %s3375_s17 = smov 0   ;;  %s3377_s18 = smov 0  }
   0x8   :  { %s3379_s19 = smov 0   ;;  %s3381_s20 = smov 0  }
   0x9 LB: > { %s2558_s21 = sadd.s32 4294967295, %s3332_s20   ;;  %s2559_s22 = sadd.s32 4294967294, %s3332_s20   ;;  %s3332_s20 = sphi %s3381_s20, %s23_s20   ;;  %s3328_s19 = sphi %s3379_s19, %s5323_s19   ;;  %s3324_s18 = sphi %s3377_s18, %s5322_s18   ;;  %s3320_s17 = sphi %s3375_s17, %s5321_s17   ;;  %s3316_s16 = sphi %s3373_s16, %s5320_s16   ;;  %s3312_s15 = sphi %s3371_s15, %s5319_s15  }
   0xa   : > { %p57_p0 = scmp.ne.s32.totalorder %s3316_s16, %s3312_s15  ;;  %p3405_p1 = scmp.eq.s32.totalorder %s2558_s21, 0 }
   0xb   : > { %p3409_p2 = scmp.eq.s32.totalorder %s2558_s21, 1  ;;  %p152_p3 = scmp.eq.s32.totalorder %s2559_s22, 1 }
   0xc   : > { %s4990_s23 = scalar_select %p3405_p1, 1, 0 }
   0xd   : > { %s4991_s24 = scalar_select %p3409_p2, 1, 0 }
   0xe   : > { %p3415_p4 = por %p3405_p1, %p57_p0  ;;  %p2560_p5 = scmp.ge.s32.totalorder %s3332_s20, 1 }
   0xf   : > { %p3420_p6 = por %p152_p3, %p57_p0  ;;  %p159_p7 = scmp.lt.s32.totalorder %s3332_s20, 3 }
  0x10   : > { %s4992_s25 = scalar_select %p3415_p4, 1, 0 }
  0x11   : > { %s4993_s26 = scalar_select %p3420_p6, 1, 0 }
  0x12   : > { %s172_s29 = sshll.u32 %s4771_s1, 4  ;;  %p3428_p8 = pnand %p2560_p5, %p159_p7  ;;  %s173_s29 = int_to_ptr.vmem [resolvable:$true] %s172_s29 }
  0x13   : > { %s183_s7 = sshll.u32 %s4772_s2, 4  ;;  %s3334_s9 = smov [#allocation10]   ;;  %s184_s7 = int_to_ptr.vmem [resolvable:$true] %s183_s7 }
  0x14   : > { %s4994_s30 = scalar_select %p3428_p8, 1, 0 }
  0x15   : > { %p3066_p10 = pneg %p3428_p8  ;;  %s193_s10 = sshll.u32 %s3334_s9, 4  ;;  %s3444_s10 = int_to_ptr.vmem [resolvable:$true] %s193_s10 }
  0x16   : > { %s3150_s11 = scalar_lea.vmem %s173_s29, 128  ;;  %p3158_p5 = scmp.lt.s32.totalorder %s173_s29, %s173_s29 }
  0x17   : > { %p3440_p11 = pnand %p3066_p10, %p3405_p1  ;;  %p3151_p12 = scmp.ne.s32.totalorder %s173_s29, %s3150_s11 }
  0x18   : > { %p3159_p7 = scmp.lt.s32.totalorder %s3150_s11, %s3150_s11 }
  0x19   : > { %p3152_p13 = pneg %p3440_p11 }
  0x1a   : > { %p3160_p10 = por %p3159_p7, %p3158_p5 }
  0x1b   : > { %p3153_p0 = pnand %p3152_p13, %p3151_p12 }
  0x1d   : > { %p3154_p3 = pneg %p3153_p0 }
  0x1f   : > { %p3161_p9 = pnand %p3160_p10, %p3154_p3 }
  0x21   : > { %3164 = shalt.err (!%p3161_p9)
}
  0x22   : > { %s3335_s12 = smov [#allocation7]   ;;  %s3165_s13 = scalar_lea.vmem %s184_s7, 16 }
  0x23   : > { %3069 = dma.vmem_to_smem (!%p3440_p11), %s173_s29, 128, %s3335_s12, [#allocation6]  }
  0x24   : > { %p3166_p6 = scmp.ne.s32.totalorder %s184_s7, %s3165_s13  ;;  %p3173_p8 = scmp.lt.s32.totalorder %s184_s7, %s184_s7 }
  0x25   : > { %p3174_p2 = scmp.lt.s32.totalorder %s3165_s13, %s3165_s13 }
  0x26   : > { %p3168_p1 = pnand %p3166_p6, %p3152_p13 }
  0x27   : > { %p3175_p12 = por %p3174_p2, %p3173_p8 }
  0x28   : > { %p3169_p4 = pneg %p3168_p1 }
  0x2a   : > { %p3176_p0 = pnand %p3175_p12, %p3169_p4 }
  0x2c   : > { %3179 = shalt.err (!%p3176_p0)
}
  0x2d   : > { %s3336_s14 = smov [#allocation8]   ;;  %s3180_s27 = scalar_lea.hbm %s4773_s3, 8192 }
  0x2e   : > { %3072 = dma.vmem_to_smem (!%p3440_p11), %s184_s7, 16, %s3336_s14, [#allocation9]  }
  0x2f   : > { %p3181_p9 = scmp.ne.s32.totalorder %s4773_s3, %s3180_s27  ;;  %p3187_p2 = scmp.lt.u32.totalorder %s3180_s27, %s4773_s3 }
  0x31   : > { %p3183_p1 = pnand %p3181_p9, %p3152_p13 }
  0x33   : > { %p3184_p6 = pneg %p3183_p1 }
  0x35   : > { %p3189_p4 = pnand %p3187_p2, %p3184_p6 }
  0x37   : > { %3192 = shalt.err (!%p3189_p4)
}
  0x38   : > { %s3193_s7 = scalar_lea.vmem %s3444_s10, 8192  ;;  %p3201_p7 = scmp.lt.s32.totalorder %s3444_s10, %s3444_s10 }
  0x39   : > { %p3194_p8 = scmp.ne.s32.totalorder %s3444_s10, %s3193_s7  ;;  %p3202_p10 = scmp.lt.s32.totalorder %s3193_s7, %s3193_s7 }
  0x3b   : > { %p3196_p3 = pnand %p3194_p8, %p3152_p13  ;;  %p3203_p12 = por %p3202_p10, %p3201_p7 }
  0x3d   : > { %p3197_p5 = pneg %p3196_p3 }
  0x3f   : > { %p3204_p0 = pnand %p3203_p12, %p3197_p5 }
  0x41   : > { %3207 = shalt.err (!%p3204_p0)
}
  0x42   : > { %s3337_s9 = smov 512   ;;  %s3338_s11 = smov 32  }
  0x43   : > { %3075 = dma.hbm_to_vmem [thread:$0]  (!%p3440_p11), %s4773_s3, 8192, %s3444_s10, [#allocation11], %s3337_s9, %s3337_s9, %s3338_s11  }
  0x44   : > { %s44_s14 = sadd.s32 1, %s3320_s17  ;;  %s35_s21 = sadd.s32 1, %s3328_s19 }
  0x45   : > { %p51_p13 = scmp.ne.s32.totalorder %s3320_s17, %s3316_s16  ;;  %p37_p9 = scmp.ge.s32.totalorder %s35_s21, 2 }
  0x46   : > { %p52_p1 = scmp.eq.s32.totalorder %s3332_s20, 0  ;;  %p4996_p6 = scmp.ne.s32.totalorder %s4991_s24, 0 }
  0x47   : > { %p3087_p4 = scmp.lt.s32.totalorder %s3332_s20, 2  ;;  %s5325_s21 = smov (%p37_p9, %s35_s21), 0 }
  0x48   : > { %p3491_p2 = por %p4996_p6, %p51_p13  ;;  %p53_p8 = por %p52_p1, %p51_p13 }
  0x49   : > { %s207_s8 = sand.u32 1, %s3320_s17   ;;  %s39_s27 = ssub.s32 %s3328_s19, %s5325_s21 }
  0x4a   : > { %p42_p3 = scmp.eq.s32.totalorder %s39_s27, 0  ;;  %s2565_s10 = sshll.u32 %s207_s8, 3 }
  0x4b   : > { %s2624_s28 = sshll.u32 %s3328_s19, 7  ;;  %s211_s7 = scalar_lea.vmem [#allocation3], %s2565_s10 }
  0x4c   : > { %s3503_s29 = scalar_select %p42_p3, %s3320_s17, %s44_s14  }
  0x4d   : > { %s3508_s24 = scalar_lea.hbm %s4770_s0, %s2624_s28  ;;  %s219_s9 = sshll.u32 %s211_s7, 4  ;;  %s3510_s9 = int_to_ptr.vmem [resolvable:$true] %s219_s9 }
  0x4e   : > { %p3514_p11 = pnand %p3087_p4, %p53_p8  ;;  %s3518_s13 = scalar_lea.sflag [#allocation4], %s207_s8 }
  0x4f   : > { %s3208_s14 = scalar_lea.hbm %s3508_s24, 128  ;;  %s3213_s28 = scalar_lea.hbm %s4770_s0, 256 }
  0x50   : > { %p3209_p5 = scmp.ne.s32.totalorder %s3508_s24, %s3208_s14  ;;  %p3210_p7 = pneg %p3514_p11 }
  0x51   : > { %p3214_p0 = scmp.lt.u32.totalorder %s3508_s24, %s4770_s0  ;;  %p3215_p13 = scmp.lt.u32.totalorder %s3213_s28, %s3208_s14 }
  0x52   : > { %p3211_p10 = pnand %p3210_p7, %p3209_p5  ;;  %p3217_p1 = scmp.lt.u32.totalorder %s3208_s14, %s3508_s24 }
  0x53   : > { %p3216_p9 = por %p3215_p13, %p3214_p0 }
  0x54   : > { %p3212_p12 = pneg %p3211_p10 }
  0x55   : > { %p3218_p6 = por %p3217_p1, %p3216_p9 }
  0x57   : > { %p3219_p4 = pnand %p3218_p6, %p3212_p12 }
  0x59   : > { %3222 = shalt.err (!%p3219_p4)
}
  0x5a   : > { %s3223_s8 = scalar_lea.vmem %s3510_s9, 128  ;;  %s3339_s7 = smov [#allocation3]  }
  0x5b   : > { %p3224_p8 = scmp.ne.s32.totalorder %s3510_s9, %s3223_s8  ;;  %s3228_s27 = sshll.u32 %s3339_s7, 4  ;;  %s3229_s27 = int_to_ptr.vmem [resolvable:$false] %s3228_s27 }
  0x5c   : > { %s3230_s10 = scalar_lea.vmem %s3229_s27, 256  ;;  %p3231_p10 = scmp.lt.s32.totalorder %s3510_s9, %s3229_s27 }
  0x5d   : > { %p3226_p3 = pnand %p3224_p8, %p3210_p7  ;;  %p3232_p0 = scmp.lt.s32.totalorder %s3230_s10, %s3223_s8 }
  0x5f   : > { %p3227_p5 = pneg %p3226_p3  ;;  %p3233_p13 = por %p3232_p0, %p3231_p10 }
  0x61   : > { %p3234_p9 = pnand %p3233_p13, %p3227_p5 }
  0x63   : > { %3237 = shalt.err (!%p3234_p9)
}
  0x64   : > { %s3340_s14 = smov 2   ;;  %p4999_p7 = scmp.ne.s32.totalorder %s4994_s30, 0 }
  0x65   : > { %3079 = dma.hbm_to_vmem [thread:$0]  (!%p3514_p11), %s3508_s24, 128, %s3510_s9, %s3518_s13, %s3338_s11, %s3338_s11, %s3340_s14  }
  0x66   : > { %231 = sbr.rel (%p4999_p7) target bundleno = 650 (0x28a), region = 36 }
  0x6d   : > { %s3551_s28 = sand.u32 1, %s3316_s16   ;;  %p5000_p12 = scmp.ne.s32.totalorder %s4992_s25, 0 }
  0x6e   : > { %s2569_s5 = sshll.u32 %s3551_s28, 3  ;;  %s234_s6 = scalar_lea.sflag [#allocation4], %s3551_s28 }
  0x6f   : > { %s3555_s8 = scalar_lea.vmem [#allocation3], %s2569_s5 }
  0x70   : > { %3291 = dma.done.wait (%p5000_p12), %s234_s6, 128  }
  0x71   : > { %3293 = vsyncadd (%p5000_p12), %s234_s6, 4294967168  ;;  %p5001_p11 = scmp.ne.s32.totalorder %s4990_s23, 0 }
  0x73   : > { %3295 = dma.done.wait (%p5001_p11), [#allocation6], 128  }
  0x74   : > { %3297 = vsyncadd (%p5001_p11), [#allocation6], 4294967168 }
  0x75   : > { %3299 = dma.done.wait (%p5001_p11), [#allocation9], 16  }
  0x76   : > { %3301 = vsyncadd (%p5001_p11), [#allocation9], 4294967280 }
  0x77   : > { %3303 = dma.done.wait (%p5001_p11), [#allocation11], 8192  }
  0x78   : > { %3305 = vsyncadd (%p5001_p11), [#allocation11], 4294959104 }
  0x79   : > { %254 = sfence }
  0x7a   : > { %v450_v0 = vld [vmem:[#allocation10 + $0x8] sm:$0xff]  ;;  %v452_v2 = vld [vmem:[#allocation10 + $0x18] sm:$0xff]  ;;  %v449_v7 = vld [vmem:[#allocation10] sm:$0xff]  ;;  %v4779_v9 = vmov 0.0   ;;  %s3748_s23 = sld [smem:[#allocation7]]  ;;  %s3750_s25 = sld [smem:[#allocation7 + $0x1]] }
  0x7b   : > { %v454_v1 = vld [vmem:[#allocation10 + $0x28] sm:$0xff]  ;;  %v513_v3 = vand.u32 4294901760, %v450_v0  ;;  %v456_v5 = vld [vmem:[#allocation10 + $0x38] sm:$0xff]  ;;  %v1417_v6 = vand.u32 4294901760, %v452_v2  ;;  %v453_v8 = vld [vmem:[#allocation10 + $0x20] sm:$0xff]  ;;  %609 = vmatprep.mubr.f32.mxu0 %v4779_v9  ;;  %1513 = vmatprep.mubr.f32.mxu1 %v4779_v9  ;;  %v515_v11 = vand.u32 4294901760, %v449_v7 }
  0x7c   : > { %v517_v4 = vand.u32 4294901760, %v454_v1  ;;  %v1421_v10 = vand.u32 4294901760, %v456_v5  ;;  %v519_v12 = vand.u32 4294901760, %v453_v8  ;;  %v451_v13 = vld [vmem:[#allocation10 + $0x10] sm:$0xff]  ;;  %v458_v15 = vld [vmem:[#allocation10 + $0x48] sm:$0xff]  ;;  %v460_v21 = vld [vmem:[#allocation10 + $0x58] sm:$0xff] }
  0x7d   : > { %v455_v14 = vld [vmem:[#allocation10 + $0x30] sm:$0xff]  ;;  %v3577_v17 = vsub.f32 %v450_v0, %v513_v3  ;;  %v3581_v19 = vsub.f32 %v452_v2, %v1417_v6  ;;  %v462_v20 = vld [vmem:[#allocation10 + $0x68] sm:$0xff]  ;;  %v464_v22 = vld [vmem:[#allocation10 + $0x78] sm:$0xff]  ;;  %v3589_v26 = vsub.f32 %v449_v7, %v515_v11  ;;  %v1419_v29 = vand.u32 4294901760, %v451_v13  ;;  %s3753_s30 = sld [smem:[#allocation7 + $0x2]]  ;;  %s3766_s11 = sld [smem:[#allocation7 + $0x3]] }
  0x7e   : > { %v3575_v16 = vpack.c.bf16 %v517_v4, %v513_v3  ;;  %v3579_v18 = vsub.f32 %v454_v1, %v517_v4  ;;  %v3583_v23 = vpack.c.bf16 %v1421_v10, %v1417_v6  ;;  %v3585_v24 = vsub.f32 %v456_v5, %v1421_v10  ;;  %v457_v27 = vld [vmem:[#allocation10 + $0x40] sm:$0xff]  ;;  %v459_v37 = vld [vmem:[#allocation10 + $0x50] sm:$0xff]  ;;  %v466_v43 = vld [vmem:[#allocation10 + $0x88] sm:$0xff]  ;;  %s3776_s24 = sld [smem:[#allocation8]]  ;;  %s3788_s12 = sld [smem:[#allocation7 + $0x81]] }
  0x7f   : > { %5003 = vst [vmem:[#allocation19_spill] sm:$0xff] %v3577_v17  ;;  %5005 = vst [vmem:[#allocation21_spill] sm:$0xff] %v3581_v19  ;;  %v3587_v25 = vpack.c.bf16 %v519_v12, %v515_v11  ;;  %v3592_v28 = vsub.f32 %v453_v8, %v519_v12  ;;  %v1423_v30 = vand.u32 4294901760, %v455_v14  ;;  %v521_v31 = vand.u32 4294901760, %v458_v15  ;;  %v461_v32 = vld [vmem:[#allocation10 + $0x60] sm:$0xff]  ;;  %v463_v38 = vld [vmem:[#allocation10 + $0x70] sm:$0xff] }
  0x80   : > { %5002 = vst [vmem:[#allocation18_spill] sm:$0xff] %v3575_v16  ;;  %5004 = vst [vmem:[#allocation20_spill] sm:$0xff] %v3579_v18  ;;  %2627 = vmatprep.subr.bf16.mxu0 %v3575_v16  ;;  %2819 = vmatprep.subr.bf16.mxu1 %v3583_v23  ;;  %v525_v33 = vand.u32 4294901760, %v462_v20  ;;  %v1425_v34 = vand.u32 4294901760, %v460_v21  ;;  %v1429_v35 = vand.u32 4294901760, %v464_v22  ;;  %v523_v36 = vand.u32 4294901760, %v457_v27 }
  0x81   : > { %5006 = vst [vmem:[#allocation22_spill] sm:$0xff] %v3583_v23  ;;  %5007 = vst [vmem:[#allocation23_spill] sm:$0xff] %v3585_v24  ;;  %2629 = vmatpush1.bf16.msra.mxu0 %v3587_v25  ;;  %v3596_v39 = vpack.c.bf16 %v1423_v30, %v1419_v29  ;;  %v3598_v40 = vsub.f32 %v451_v13, %v1419_v29  ;;  %v3600_v41 = vsub.f32 %v455_v14, %v1423_v30  ;;  %v470_v44 = vld [vmem:[#allocation10 + $0xa8] sm:$0xff]  ;;  %v468_v45 = vld [vmem:[#allocation10 + $0x98] sm:$0xff]  ;;  %s3786_s9 = sld [smem:[#allocation7 + $0x80]]  ;;  %s3791_s13 = sld [smem:[#allocation7 + $0x82]] }
  0x82   : > { %5008 = vst [vmem:[#allocation24_spill] sm:$0xff] %v3587_v25  ;;  %5009 = vst [vmem:[#allocation25_spill] sm:$0xff] %v3589_v26  ;;  %v3602_v42 = vsub.f32 %v458_v15, %v521_v31  ;;  %v3604_v46 = vpack.c.bf16 %v525_v33, %v521_v31  ;;  %v3606_v47 = vsub.f32 %v462_v20, %v525_v33  ;;  %v472_v50 = vld [vmem:[#allocation10 + $0xb8] sm:$0xff]  ;;  %v527_v52 = vand.u32 4294901760, %v461_v32  ;;  %v465_v59 = vld [vmem:[#allocation10 + $0x80] sm:$0xff]  ;;  %s3798_s7 = sld [smem:[#allocation7 + $0x83]] }
  0x83   : > { %5010 = vst [vmem:[#allocation26_spill] sm:$0xff] %v3592_v28  ;;  %5011 = vst [vmem:[#allocation27_spill] sm:$0xff] %v3596_v39  ;;  %v3608_v48 = vpack.c.bf16 %v1429_v35, %v1425_v34  ;;  %v3610_v49 = vsub.f32 %v460_v21, %v1425_v34  ;;  %2821 = vmatpush1.bf16.msra.mxu1 %v3596_v39  ;;  %v3613_v51 = vsub.f32 %v464_v22, %v1429_v35  ;;  %v469_v60 = vld [vmem:[#allocation10 + $0xa0] sm:$0xff]  ;;  %v467_v1 = vld [vmem:[#allocation10 + $0x90] sm:$0xff]  ;;  %s3808_s27 = sld [smem:[#allocation8 + $0x1]]  ;;  %s3810_s10 = sld [smem:[#allocation7 + $0x100]] }
  0x84   : > { %5012 = vst [vmem:[#allocation28_spill] sm:$0xff] %v3598_v40  ;;  %5013 = vst [vmem:[#allocation29_spill] sm:$0xff] %v3600_v41  ;;  %v3615_v53 = vsub.f32 %v457_v27, %v523_v36  ;;  %v1427_v54 = vand.u32 4294901760, %v459_v37  ;;  %2631 = vmatprep.subr.bf16.mxu0 %v3604_v46  ;;  %v1431_v55 = vand.u32 4294901760, %v463_v38  ;;  %v529_v56 = vand.u32 4294901760, %v466_v43  ;;  %v471_v2 = vld [vmem:[#allocation10 + $0xb0] sm:$0xff] }
  0x85   : > { %5014 = vst [vmem:[#allocation30_spill] sm:$0xff] %v3602_v42  ;;  %5015 = vst [vmem:[#allocation31_spill] sm:$0xff] %v3604_v46  ;;  %2823 = vmatprep.subr.bf16.mxu1 %v3608_v48  ;;  %v533_v57 = vand.u32 4294901760, %v470_v44  ;;  %v1433_v58 = vand.u32 4294901760, %v468_v45  ;;  %v3619_v61 = vpack.c.bf16 %v527_v52, %v523_v36  ;;  %v3621_v62 = vsub.f32 %v461_v32, %v527_v52  ;;  %v474_v3 = vld [vmem:[#allocation10 + $0xc8] sm:$0xff]  ;;  %v476_v10 = vld [vmem:[#allocation10 + $0xd8] sm:$0xff] }
  0x86   : > { %5016 = vst [vmem:[#allocation32_spill] sm:$0xff] %v3606_v47  ;;  %5017 = vst [vmem:[#allocation33_spill] sm:$0xff] %v3608_v48  ;;  %v3623_v63 = vsub.f32 %v459_v37, %v1427_v54  ;;  %v1437_v0 = vand.u32 4294901760, %v472_v50  ;;  %v3625_v4 = vpack.c.bf16 %v1431_v55, %v1427_v54  ;;  %v3627_v5 = vsub.f32 %v463_v38, %v1431_v55  ;;  %v478_v8 = vld [vmem:[#allocation10 + $0xe8] sm:$0xff]  ;;  %v480_v11 = vld [vmem:[#allocation10 + $0xf8] sm:$0xff]  ;;  %s3826_s14 = sld [smem:[#allocation7 + $0x101]] }
  0x87   : > { %5018 = vst [vmem:[#allocation34_spill] sm:$0xff] %v3610_v49  ;;  %5019 = vst [vmem:[#allocation35_spill] sm:$0xff] %v3613_v51  ;;  %v3629_v6 = vpack.c.bf16 %v533_v57, %v529_v56  ;;  %v3631_v7 = vsub.f32 %v466_v43, %v529_v56  ;;  %2633 = vmatpush1.bf16.msra.mxu0 %v3619_v61  ;;  %v3634_v12 = vsub.f32 %v470_v44, %v533_v57  ;;  %v473_v33 = vld [vmem:[#allocation10 + $0xc0] sm:$0xff]  ;;  %v475_v43 = vld [vmem:[#allocation10 + $0xd0] sm:$0xff]  ;;  %s3849_s5 = sld [smem:[#allocation7 + $0x102]]  ;;  %s3851_s6 = sld [smem:[#allocation7 + $0x103]] }
  0x88   : > { %5020 = vst [vmem:[#allocation36_spill] sm:$0xff] %v3619_v61  ;;  %5021 = vst [vmem:[#allocation37_spill] sm:$0xff] %v3625_v4  ;;  %v3636_v13 = vpack.c.bf16 %v1437_v0, %v1433_v58  ;;  %v3638_v14 = vsub.f32 %v468_v45, %v1433_v58  ;;  %v3640_v15 = vsub.f32 %v472_v50, %v1437_v0  ;;  %2825 = vmatpush1.bf16.msra.mxu1 %v3625_v4  ;;  %v477_v38 = vld [vmem:[#allocation10 + $0xe0] sm:$0xff]  ;;  %v479_v44 = vld [vmem:[#allocation10 + $0xf0] sm:$0xff] }
  0x89   : > { %5022 = vst [vmem:[#allocation38_spill] sm:$0xff] %v3629_v6  ;;  %2635 = vmatprep.subr.bf16.mxu0 %v3629_v6  ;;  %v531_v20 = vand.u32 4294901760, %v465_v59  ;;  %v535_v21 = vand.u32 4294901760, %v469_v60  ;;  %v1435_v22 = vand.u32 4294901760, %v467_v1  ;;  %v1439_v27 = vand.u32 4294901760, %v471_v2  ;;  %v482_v55 = vld [vmem:[#allocation10 + $0x108] sm:$0xff] }
  0x8a   : > { %5023 = vst [vmem:[#allocation39_spill] sm:$0xff] %v3636_v13  ;;  %2827 = vmatprep.subr.bf16.mxu1 %v3636_v13  ;;  %v537_v29 = vand.u32 4294901760, %v474_v3  ;;  %v541_v30 = vand.u32 4294901760, %v478_v8  ;;  %v1441_v31 = vand.u32 4294901760, %v476_v10  ;;  %v1445_v32 = vand.u32 4294901760, %v480_v11  ;;  %v486_v56 = vld [vmem:[#allocation10 + $0x128] sm:$0xff] }
  0x8b   : > { %v3645_v34 = vpack.c.bf16 %v535_v21, %v531_v20  ;;  %v3647_v35 = vsub.f32 %v465_v59, %v531_v20  ;;  %v3649_v36 = vsub.f32 %v469_v60, %v535_v21  ;;  %v3651_v37 = vpack.c.bf16 %v1439_v27, %v1435_v22  ;;  %v484_v57 = vld [vmem:[#allocation10 + $0x118] sm:$0xff]  ;;  %v485_v9 = vld [vmem:[#allocation10 + $0x120] sm:$0xff]  ;;  %v494_v13 = vld [vmem:[#allocation10 + $0x168] sm:$0xff] }
  0x8c   : > { %v3653_v45 = vsub.f32 %v467_v1, %v1435_v22  ;;  %v3655_v50 = vsub.f32 %v471_v2, %v1439_v27  ;;  %v3657_v52 = vpack.c.bf16 %v541_v30, %v537_v29  ;;  %v3659_v54 = vsub.f32 %v474_v3, %v537_v29  ;;  %v488_v21 = vld [vmem:[#allocation10 + $0x138] sm:$0xff]  ;;  %v491_v46 = vld [vmem:[#allocation10 + $0x150] sm:$0xff] }
  0x8d   : > { %5024 = vst [vmem:[#allocation40_spill] sm:$0xff] %v3645_v34  ;;  %5025 = vst [vmem:[#allocation41_spill] sm:$0xff] %v3651_v37  ;;  %2637 = vmatpush1.bf16.msra.mxu0 %v3645_v34  ;;  %2829 = vmatpush1.bf16.msra.mxu1 %v3651_v37  ;;  %v3663_v58 = vsub.f32 %v478_v8, %v541_v30  ;;  %v3665_v59 = vpack.c.bf16 %v1445_v32, %v1441_v31  ;;  %v539_v0 = vand.u32 4294901760, %v473_v33  ;;  %v481_v30 = vld [vmem:[#allocation10 + $0x100] sm:$0xff]  ;;  %v490_v34 = vld [vmem:[#allocation10 + $0x148] sm:$0xff] }
  0x8e   : > { %5026 = vst [vmem:[#allocation42_spill] sm:$0xff] %v3657_v52  ;;  %v3667_v60 = vsub.f32 %v476_v10, %v1441_v31  ;;  %2639 = vmatprep.subr.bf16.mxu0 %v3657_v52  ;;  %v3670_v1 = vsub.f32 %v480_v11, %v1445_v32  ;;  %v543_v2 = vand.u32 4294901760, %v477_v38  ;;  %v1443_v3 = vand.u32 4294901760, %v475_v43  ;;  %v483_v10 = vld [vmem:[#allocation10 + $0x110] sm:$0xff]  ;;  %v492_v48 = vld [vmem:[#allocation10 + $0x158] sm:$0xff] }
  0x8f   : > { %5027 = vst [vmem:[#allocation43_spill] sm:$0xff] %v3665_v59  ;;  %v1447_v20 = vand.u32 4294901760, %v479_v44  ;;  %2831 = vmatprep.subr.bf16.mxu1 %v3665_v59  ;;  %v3673_v22 = vsub.f32 %v473_v33, %v539_v0  ;;  %v545_v27 = vand.u32 4294901760, %v482_v55  ;;  %v549_v8 = vand.u32 4294901760, %v486_v56  ;;  %v487_v52 = vld [vmem:[#allocation10 + $0x130] sm:$0xff] }
  0x90   : > { %5028 = vst [vmem:[#allocation44_spill] sm:$0xff] %v3667_v60  ;;  %v1449_v29 = vand.u32 4294901760, %v484_v57  ;;  %v3675_v31 = vpack.c.bf16 %v543_v2, %v539_v0  ;;  %v3677_v37 = vsub.f32 %v477_v38, %v543_v2  ;;  %v3681_v32 = vsub.f32 %v475_v43, %v1443_v3  ;;  %v495_v16 = vld [vmem:[#allocation10 + $0x170] sm:$0xff] }
  0x91   : > { %v3679_v11 = vpack.c.bf16 %v1447_v20, %v1443_v3  ;;  %v3683_v59 = vsub.f32 %v479_v44, %v1447_v20  ;;  %v3685_v33 = vpack.c.bf16 %v549_v8, %v545_v27  ;;  %v3687_v6 = vsub.f32 %v482_v55, %v545_v27  ;;  %v496_v55 = vld [vmem:[#allocation10 + $0x178] sm:$0xff] }
  0x92   : > { %5029 = vst [vmem:[#allocation45_spill] sm:$0xff] %v3675_v31  ;;  %v3689_v4 = vsub.f32 %v486_v56, %v549_v8  ;;  %2641 = vmatpush1.bf16.msra.mxu0 %v3675_v31  ;;  %v1453_v38 = vand.u32 4294901760, %v488_v21  ;;  %v3693_v0 = vsub.f32 %v484_v57, %v1449_v29  ;;  %v547_v43 = vand.u32 4294901760, %v481_v30  ;;  %v489_v57 = vld [vmem:[#allocation10 + $0x140] sm:$0xff] }
  0x93   : > { %5030 = vst [vmem:[#allocation46_spill] sm:$0xff] %v3679_v11  ;;  %5031 = vst [vmem:[#allocation47_spill] sm:$0xff] %v3685_v33  ;;  %2833 = vmatpush1.bf16.msra.mxu1 %v3679_v11  ;;  %v551_v2 = vand.u32 4294901760, %v485_v9  ;;  %2643 = vmatprep.subr.bf16.mxu0 %v3685_v33  ;;  %v1451_v3 = vand.u32 4294901760, %v483_v10  ;;  %v1455_v44 = vand.u32 4294901760, %v487_v52  ;;  %v553_v20 = vand.u32 4294901760, %v490_v34 }
  0x94   : > { %5032 = vst [vmem:[#allocation48_spill] sm:$0xff] %v3693_v0  ;;  %v557_v61 = vand.u32 4294901760, %v494_v13  ;;  %v3696_v27 = vpack.c.bf16 %v1453_v38, %v1449_v29  ;;  %v3698_v56 = vsub.f32 %v488_v21, %v1453_v38  ;;  %v3702_v11 = vsub.f32 %v481_v30, %v547_v43  ;;  %v493_v31 = vld [vmem:[#allocation10 + $0x160] sm:$0xff]  ;;  %v498_v29 = vld [vmem:[#allocation10 + $0x188] sm:$0xff] }
  0x95   : > { %v3700_v8 = vpack.c.bf16 %v551_v2, %v547_v43  ;;  %v3704_v39 = vsub.f32 %v485_v9, %v551_v2  ;;  %v3706_v33 = vpack.c.bf16 %v1455_v44, %v1451_v3  ;;  %v3708_v25 = vsub.f32 %v483_v10, %v1451_v3  ;;  %v502_v0 = vld [vmem:[#allocation10 + $0x1a8] sm:$0xff] }
  0x96   : > { %5033 = vst [vmem:[#allocation49_spill] sm:$0xff] %v3696_v27  ;;  %5034 = vst [vmem:[#allocation50_spill] sm:$0xff] %v3698_v56  ;;  %v3710_v23 = vsub.f32 %v487_v52, %v1455_v44  ;;  %2835 = vmatprep.subr.bf16.mxu1 %v3696_v27  ;;  %v3714_v21 = vpack.c.bf16 %v557_v61, %v553_v20  ;;  %v3716_v30 = vsub.f32 %v490_v34, %v553_v20  ;;  %v510_v56 = vld [vmem:[#allocation10 + $0x1e8] sm:$0xff] }
  0x97   : > { %5035 = vst [vmem:[#allocation51_spill] sm:$0xff] %v3700_v8  ;;  %5036 = vst [vmem:[#allocation52_spill] sm:$0xff] %v3702_v11  ;;  %2645 = vmatpush1.bf16.msra.mxu0 %v3700_v8  ;;  %v3718_v38 = vsub.f32 %v494_v13, %v557_v61  ;;  %v1457_v9 = vand.u32 4294901760, %v492_v48  ;;  %2837 = vmatpush1.bf16.msra.mxu1 %v3706_v33  ;;  %v1461_v10 = vand.u32 4294901760, %v496_v55  ;;  %v555_v43 = vand.u32 4294901760, %v489_v57  ;;  %v503_v11 = vld [vmem:[#allocation10 + $0x1b0] sm:$0xff] }
  0x98   : > { %5037 = vst [vmem:[#allocation53_spill] sm:$0xff] %v3704_v39  ;;  %5038 = vst [vmem:[#allocation54_spill] sm:$0xff] %v3706_v33  ;;  %v559_v52 = vand.u32 4294901760, %v493_v31  ;;  %v1459_v2 = vand.u32 4294901760, %v491_v46  ;;  %2647 = vmatprep.subr.bf16.mxu0 %v3714_v21  ;;  %v1463_v44 = vand.u32 4294901760, %v495_v16  ;;  %v561_v27 = vand.u32 4294901760, %v498_v29 }
  0x99   : > { %5039 = vst [vmem:[#allocation55_spill] sm:$0xff] %v3708_v25  ;;  %5040 = vst [vmem:[#allocation56_spill] sm:$0xff] %v3710_v23  ;;  %v3722_v3 = vsub.f32 %v492_v48, %v1457_v9  ;;  %v565_v8 = vand.u32 4294901760, %v502_v0  ;;  %v500_v23 = vld [vmem:[#allocation10 + $0x198] sm:$0xff]  ;;  %v3724_v34 = vpack.c.bf16 %v1461_v10, %v1457_v9  ;;  %v3726_v61 = vsub.f32 %v496_v55, %v1461_v10  ;;  %v497_v33 = vld [vmem:[#allocation10 + $0x180] sm:$0xff] }
  0x9a   : > { %5041 = vst [vmem:[#allocation57_spill] sm:$0xff] %v3714_v21  ;;  %5042 = vst [vmem:[#allocation58_spill] sm:$0xff] %v3716_v30  ;;  %v504_v25 = vld [vmem:[#allocation10 + $0x1b8] sm:$0xff]  ;;  %v3728_v13 = vpack.c.bf16 %v559_v52, %v555_v43  ;;  %v3730_v20 = vsub.f32 %v489_v57, %v555_v43  ;;  %v499_v30 = vld [vmem:[#allocation10 + $0x190] sm:$0xff]  ;;  %v3732_v39 = vsub.f32 %v493_v31, %v559_v52  ;;  %v1465_v31 = vand.u32 4294901760, %v500_v23 }
  0x9b   : > { %5043 = vst [vmem:[#allocation59_spill] sm:$0xff] %v3718_v38  ;;  %5044 = vst [vmem:[#allocation60_spill] sm:$0xff] %v3722_v3  ;;  %v501_v38 = vld [vmem:[#allocation10 + $0x1a0] sm:$0xff]  ;;  %v3734_v48 = vpack.c.bf16 %v1463_v44, %v1459_v2  ;;  %v3736_v21 = vsub.f32 %v491_v46, %v1459_v2  ;;  %v3738_v3 = vsub.f32 %v495_v16, %v1463_v44  ;;  %v506_v9 = vld [vmem:[#allocation10 + $0x1c8] sm:$0xff]  ;;  %2839 = vmatprep.subr.bf16.mxu1 %v3724_v34 }
  0x9c   : > { %5045 = vst [vmem:[#allocation61_spill] sm:$0xff] %v3724_v34  ;;  %5046 = vst [vmem:[#allocation62_spill] sm:$0xff] %v3726_v61  ;;  %2649 = vmatpush1.bf16.msra.mxu0 %v3728_v13  ;;  %v3742_v55 = vpack.c.bf16 %v565_v8, %v561_v27  ;;  %v3744_v57 = vsub.f32 %v498_v29, %v561_v27  ;;  %v3746_v10 = vsub.f32 %v502_v0, %v565_v8  ;;  %v508_v29 = vld [vmem:[#allocation10 + $0x1d8] sm:$0xff] }
  0x9d   : > { %5047 = vst [vmem:[#allocation63_spill] sm:$0xff] %v3728_v13  ;;  %5048 = vst [vmem:[#allocation64_spill] sm:$0xff] %v3730_v20  ;;  %2841 = vmatpush1.bf16.msra.mxu1 %v3734_v48  ;;  %v1469_v16 = vand.u32 4294901760, %v504_v25  ;;  %v563_v46 = vand.u32 4294901760, %v497_v33  ;;  %v567_v43 = vand.u32 4294901760, %v501_v38  ;;  %v1467_v52 = vand.u32 4294901760, %v499_v30 }
  0x9e   : > { %5049 = vst [vmem:[#allocation65_spill] sm:$0xff] %v3732_v39  ;;  %5050 = vst [vmem:[#allocation66_spill] sm:$0xff] %v3734_v48  ;;  %2651 = vmatprep.subr.bf16.mxu0 %v3742_v55  ;;  %v3756_v2 = vsub.f32 %v500_v23, %v1465_v31  ;;  %v1471_v27 = vand.u32 4294901760, %v503_v11  ;;  %v569_v0 = vand.u32 4294901760, %v506_v9  ;;  %v573_v8 = vand.u32 4294901760, %v510_v56  ;;  %v512_v44 = vld [vmem:[#allocation10 + $0x1f8] sm:$0xff] }
  0x9f   : > { %5051 = vst [vmem:[#allocation67_spill] sm:$0xff] %v3736_v21  ;;  %5052 = vst [vmem:[#allocation68_spill] sm:$0xff] %v3738_v3  ;;  %v3758_v13 = vpack.c.bf16 %v1469_v16, %v1465_v31  ;;  %v3760_v34 = vsub.f32 %v504_v25, %v1469_v16  ;;  %v3762_v48 = vpack.c.bf16 %v567_v43, %v563_v46  ;;  %v509_v3 = vld [vmem:[#allocation10 + $0x1e0] sm:$0xff]  ;;  %v507_v21 = vld [vmem:[#allocation10 + $0x1d0] sm:$0xff] }
  0xa0   : > { %5053 = vst [vmem:[#allocation69_spill] sm:$0xff] %v3742_v55  ;;  %5054 = vst [vmem:[#allocation70_spill] sm:$0xff] %v3744_v57  ;;  %v505_v57 = vld [vmem:[#allocation10 + $0x1c0] sm:$0xff]  ;;  %v3768_v23 = vsub.f32 %v501_v38, %v567_v43  ;;  %v3770_v55 = vpack.c.bf16 %v1471_v27, %v1467_v52  ;;  %v3774_v39 = vsub.f32 %v503_v11, %v1471_v27  ;;  %v511_v31 = vld [vmem:[#allocation10 + $0x1f0] sm:$0xff]  ;;  %v1473_v38 = vand.u32 4294901760, %v508_v29 }
  0xa1   : > { %5055 = vst [vmem:[#allocation71_spill] sm:$0xff] %v3746_v10  ;;  %5056 = vst [vmem:[#allocation72_spill] sm:$0xff] %v3756_v2  ;;  %v3764_v10 = vsub.f32 %v497_v33, %v563_v46  ;;  %v3772_v2 = vsub.f32 %v499_v30, %v1467_v52  ;;  %2843 = vmatprep.subr.bf16.mxu1 %v3758_v13  ;;  %2653 = vmatpush1.bf16.msra.mxu0 %v3762_v48  ;;  %v1477_v11 = vand.u32 4294901760, %v512_v44 }
  0xa2   : > { %5057 = vst [vmem:[#allocation73_spill] sm:$0xff] %v3758_v13  ;;  %5058 = vst [vmem:[#allocation74_spill] sm:$0xff] %v3762_v48  ;;  %v3780_v25 = vpack.c.bf16 %v573_v8, %v569_v0  ;;  %v3782_v33 = vsub.f32 %v506_v9, %v569_v0  ;;  %v3784_v16 = vsub.f32 %v510_v56, %v573_v8  ;;  %2845 = vmatpush1.bf16.msra.mxu1 %v3770_v55 }
  0xa3   : > { %5059 = vst [vmem:[#allocation75_spill] sm:$0xff] %v3764_v10  ;;  %5060 = vst [vmem:[#allocation76_spill] sm:$0xff] %v3768_v23  ;;  %v571_v30 = vand.u32 4294901760, %v505_v57  ;;  %v575_v46 = vand.u32 4294901760, %v509_v3  ;;  %v1475_v43 = vand.u32 4294901760, %v507_v21  ;;  %v3794_v9 = vsub.f32 %v508_v29, %v1473_v38 }
  0xa4   : > { %5061 = vst [vmem:[#allocation77_spill] sm:$0xff] %v3770_v55  ;;  %5062 = vst [vmem:[#allocation78_spill] sm:$0xff] %v3772_v2  ;;  %2655 = vmatprep.subr.bf16.mxu0 %v3780_v25  ;;  %v1479_v56 = vand.u32 4294901760, %v511_v31  ;;  %v4858_v52 = vand.u32 4294901760, %v3577_v17  ;;  %v3800_v0 = vpack.c.bf16 %v1477_v11, %v1473_v38  ;;  %v3802_v8 = vsub.f32 %v512_v44, %v1477_v11  ;;  %v3824_v11 = vld [vmem:[%s3555_s8 + $0x2] sm:$0x3] }
  0xa5   : > { %5063 = vst [vmem:[#allocation79_spill] sm:$0xff] %v3774_v39  ;;  %5064 = vst [vmem:[#allocation80_spill] sm:$0xff] %v3780_v25  ;;  %v3804_v55 = vpack.c.bf16 %v575_v46, %v571_v30  ;;  %v3806_v48 = vsub.f32 %v505_v57, %v571_v30  ;;  %v3812_v29 = vsub.f32 %v509_v3, %v575_v46  ;;  %v3821_v57 = vld [vmem:[%s3555_s8] sm:$0x3]  ;;  %v4866_v30 = vand.u32 4294901760, %v3581_v19 }
  0xa6   : > { %5065 = vst [vmem:[#allocation81_spill] sm:$0xff] %v3782_v33  ;;  %5066 = vst [vmem:[#allocation82_spill] sm:$0xff] %v3784_v16  ;;  %v3814_v27 = vpack.c.bf16 %v1479_v56, %v1475_v43  ;;  %v3816_v38 = vsub.f32 %v507_v21, %v1475_v43  ;;  %v3818_v44 = vsub.f32 %v511_v31, %v1479_v56  ;;  %2847 = vmatprep.subr.bf16.mxu1 %v3800_v0  ;;  %v3839_v43 = vld [vmem:[%s3555_s8 + $0x4] sm:$0x3]  ;;  %v3842_v56 = vld [vmem:[%s3555_s8 + $0x6] sm:$0x3] }
  0xa7   : > { %5067 = vst [vmem:[#allocation83_spill] sm:$0xff] %v3794_v9  ;;  %5068 = vst [vmem:[#allocation84_spill] sm:$0xff] %v3800_v0  ;;  %2657 = vmatpush1.bf16.msra.mxu0 %v3804_v55  ;;  %v635_v3 = vsub.f32 %v3577_v17, %v4858_v52  ;;  %v5076_v21 = vand.u32 4294901760, %v3579_v18  ;;  %v280_v0 = vstv %s3748_s23  ;;  %v287_v25 = vstv %s3753_s30  ;;  %s3859_s8 = sld [smem:[#allocation8 + $0x2]]  ;;  %s3865_s23 = sld [smem:[#allocation7 + $0x180]] }
  0xa8   : > { %5069 = vst [vmem:[#allocation85_spill] sm:$0xff] %v3802_v8  ;;  %5070 = vst [vmem:[#allocation86_spill] sm:$0xff] %v3804_v55  ;;  %2849 = vmatpush1.bf16.msra.mxu1 %v3814_v27  ;;  %v283_v55 = vstv %s3750_s25  ;;  %v291_v13 = vstv %s3766_s11  ;;  %v1539_v46 = vsub.f32 %v3581_v19, %v4866_v30  ;;  %v281_v17 = vmul.f32 %v280_v0, %v3821_v57  ;;  %s3867_s25 = sld [smem:[#allocation7 + $0x181]]  ;;  %s3870_s30 = sld [smem:[#allocation7 + $0x182]] }
  0xa9   : > { %5071 = vst [vmem:[#allocation87_spill] sm:$0xff] %v3806_v48  ;;  %5072 = vst [vmem:[#allocation88_spill] sm:$0xff] %v3812_v29  ;;  %v647_v31 = vsub.f32 %v3579_v18, %v5076_v21  ;;  %v636_v21 = vand.u32 4294901760, %v635_v3  ;;  %v5077_v18 = vand.u32 4294901760, %v3585_v24  ;;  %v288_v3 = vmul.f32 %v287_v25, %v3839_v43  ;;  %s3875_s11 = sld [smem:[#allocation7 + $0x183]] }
  0xaa   : > { %5073 = vst [vmem:[#allocation89_spill] sm:$0xff] %v3814_v27  ;;  %5074 = vst [vmem:[#allocation90_spill] sm:$0xff] %v3816_v38  ;;  %v1540_v19 = vand.u32 4294901760, %v1539_v46  ;;  %v308_v29 = vstv %s3791_s13  ;;  %v329_v48 = vstv %s3849_s5  ;;  %v333_v8 = vstv %s3851_s6  ;;  %s4150_s13 = sld [smem:[#allocation7 + $0x202]]  ;;  %s4179_s5 = sld [smem:[#allocation8 + $0x4]] }
  0xab   : > { %5075 = vst [vmem:[#allocation91_spill] sm:$0xff] %v3818_v44  ;;  %v648_v52 = vand.u32 4294901760, %v647_v31  ;;  %v1551_v27 = vsub.f32 %v3585_v24, %v5077_v18  ;;  %v284_v44 = vmul.f32 %v283_v55, %v3824_v11  ;;  %v292_v31 = vmul.f32 %v291_v13, %v3842_v56  ;;  %s4181_s6 = sld [smem:[#allocation7 + $0x283]] }
  0xac   : > { %v295_v18 = vstv %s3776_s24  ;;  %v301_v24 = vstv %s3786_s9  ;;  %v304_v55 = vstv %s3788_s12  ;;  %s3880_s24 = sld [smem:[#allocation8 + $0x3]]  ;;  %v334_v9 = vmul.f32 %v333_v8, %v3842_v56  ;;  %s4137_s9 = sld [smem:[#allocation7 + $0x200]] }
  0xad   : > { %v2658_v30 = vpack.c.bf16 %v648_v52, %v636_v21  ;;  %v1552_v38 = vand.u32 4294901760, %v1551_v27  ;;  %v285_v0 = vadd.f32 %v284_v44, %v281_v17  ;;  %v302_v25 = vmul.f32 %v301_v24, %v3821_v57  ;;  %s4139_s12 = sld [smem:[#allocation7 + $0x201]] }
  0xae   : > { %v305_v52 = vmul.f32 %v304_v55, %v3824_v11  ;;  %v309_v27 = vmul.f32 %v308_v29, %v3839_v43  ;;  %v312_v17 = vstv %s3798_s7  ;;  %v316_v44 = vstv %s3808_s27  ;;  %s4152_s7 = sld [smem:[#allocation7 + $0x203]]  ;;  %s4165_s27 = sld [smem:[#allocation7 + $0x280]] }
  0xaf   : > { %2659 = vmatprep.subr.bf16.mxu0 %v2658_v30  ;;  %v2850_v13 = vpack.c.bf16 %v1552_v38, %v1540_v19  ;;  %v289_v46 = vadd.f32 %v288_v3, %v285_v0  ;;  %v322_v21 = vstv %s3810_s10  ;;  %v313_v19 = vmul.f32 %v312_v17, %v3842_v56  ;;  %s4167_s10 = sld [smem:[#allocation7 + $0x281]] }
  0xb0   : > { %v306_v30 = vadd.f32 %v305_v52, %v302_v25  ;;  %v323_v24 = vmul.f32 %v322_v21, %v3821_v57  ;;  %v325_v38 = vstv %s3826_s14  ;;  %v330_v0 = vmul.f32 %v329_v48, %v3839_v43  ;;  %s4173_s14 = sld [smem:[#allocation7 + $0x282]] }
  0xb1   : > { %2851 = vmatprep.subr.bf16.mxu1 %v2850_v13  ;;  %v293_v55 = vadd.f32 %v292_v31, %v289_v46  ;;  %v326_v29 = vmul.f32 %v325_v38, %v3824_v11  ;;  %v337_v13 = vstv %s3859_s8  ;;  %v343_v17 = vstv %s3865_s23  ;;  %s4187_s8 = sld [smem:[#allocation7 + $0x300]]  ;;  %s4189_s23 = sld [smem:[#allocation7 + $0x301]] }
  0xb2   : > { %v310_v3 = vadd.f32 %v309_v27, %v306_v30  ;;  %v346_v16 = vstv %s3867_s25  ;;  %v344_v33 = vmul.f32 %v343_v17, %v3821_v57  ;;  %v350_v46 = vstv %s3870_s30  ;;  %s4196_s25 = sld [smem:[#allocation7 + $0x302]]  ;;  %s4202_s30 = sld [smem:[#allocation8 + $0x5]] }
  0xb3   : > { %v296_v25 = vadd.f32 %v295_v18, %v293_v55  ;;  %v327_v52 = vadd.f32 %v326_v29, %v323_v24  ;;  %v347_v31 = vmul.f32 %v346_v16, %v3824_v11  ;;  %v351_v27 = vmul.f32 %v350_v46, %v3839_v43 }
  0xb4   : > { %v314_v21 = vadd.f32 %v313_v19, %v310_v3  ;;  %v354_v30 = vstv %s3875_s11  ;;  %v358_v23 = vstv %s3880_s24  ;;  %v4898_v55 = vand.u32 4294901760, %v3589_v26  ;;  %s4204_s11 = sld [smem:[#allocation7 + $0x303]]  ;;  %s4209_s24 = sld [smem:[#allocation7 + $0x380]] }
  0xb5   : > { %v297_v38 = vmul.f32 0.1, %v296_v25  ;;  %v331_v39 = vadd.f32 %v330_v0, %v327_v52  ;;  %v348_v2 = vadd.f32 %v347_v31, %v344_v33  ;;  %v355_v8 = vmul.f32 %v354_v30, %v3842_v56 }
  0xb6   : > { %v317_v48 = vadd.f32 %v316_v44, %v314_v21  ;;  %v4897_v19 = vand.u32 4294901760, %v3592_v28  ;;  %v4896_v16 = vand.u32 4294901760, %v3598_v40  ;;  %v4881_v0 = vand.u32 4294901760, %v3600_v41 }
  0xb7   : > { %v298_v18 = vmax.f32 %v296_v25, %v297_v38  ;;  %v335_v24 = vadd.f32 %v334_v9, %v331_v39  ;;  %v352_v3 = vadd.f32 %v351_v27, %v348_v2  ;;  %v641_v33 = vsub.f32 %v3589_v26, %v4898_v55  ;;  %v5089_v26 = vld [vmem:[#allocation59_spill] sm:$0xff] }
  0xb8   : > { %v318_v29 = vmul.f32 0.1, %v317_v48  ;;  %v653_v39 = vsub.f32 %v3592_v28, %v4897_v19  ;;  %v4894_v9 = vand.u32 4294901760, %v3602_v42  ;;  %v1545_v2 = vsub.f32 %v3598_v40, %v4896_v16 }
  0xb9   : > { %299 = vst [vmem:[#allocation2] sm:$0x3] %v298_v18  ;;  %v338_v52 = vadd.f32 %v337_v13, %v335_v24  ;;  %v356_v25 = vadd.f32 %v355_v8, %v352_v3  ;;  %v1557_v13 = vsub.f32 %v3600_v41, %v4881_v0  ;;  %v642_v21 = vand.u32 4294901760, %v641_v33 }
  0xba   : > { %v319_v44 = vmax.f32 %v317_v48, %v318_v29  ;;  %v654_v31 = vand.u32 4294901760, %v653_v39  ;;  %v659_v46 = vsub.f32 %v3602_v42, %v4894_v9  ;;  %v1546_v27 = vand.u32 4294901760, %v1545_v2 }
  0xbb   : > { %v339_v17 = vmul.f32 0.1, %v338_v52  ;;  %v359_v38 = vadd.f32 %v358_v23, %v356_v25  ;;  %v1558_v30 = vand.u32 4294901760, %v1557_v13  ;;  %v4886_v48 = vand.u32 4294901760, %v3606_v47 }
  0xbc   : > { %320 = vst [vmem:[#allocation2 + $0x2] sm:$0x3] %v319_v44  ;;  %v3924_v18 = vpack.c.bf16 %v654_v31, %v642_v21  ;;  %v660_v24 = vand.u32 4294901760, %v659_v46  ;;  %v4884_v29 = vand.u32 4294901760, %v3610_v49  ;;  %v4883_v39 = vand.u32 4294901760, %v3613_v51 }
  0xbd   : > { %v340_v8 = vmax.f32 %v338_v52, %v339_v17  ;;  %v360_v3 = vmul.f32 0.1, %v359_v38  ;;  %v3927_v0 = vpack.c.bf16 %v1558_v30, %v1546_v27  ;;  %v671_v33 = vsub.f32 %v3606_v47, %v4886_v48 }
  0xbe   : > { %v1563_v23 = vsub.f32 %v3610_v49, %v4884_v29  ;;  %v4882_v52 = vand.u32 4294901760, %v3615_v53  ;;  %v4885_v44 = vand.u32 4294901760, %v3621_v62  ;;  %v4891_v25 = vand.u32 4294901760, %v3623_v63 }
  0xbf   : > { %341 = vst [vmem:[#allocation2 + $0x4] sm:$0x3] %v340_v8  ;;  %v361_v2 = vmax.f32 %v359_v38, %v360_v3  ;;  %v672_v13 = vand.u32 4294901760, %v671_v33  ;;  %v1575_v17 = vsub.f32 %v3613_v51, %v4883_v39  ;;  %v4890_v21 = vand.u32 4294901760, %v3627_v5 }
  0xc0   : > { %v1564_v31 = vand.u32 4294901760, %v1563_v23  ;;  %v665_v46 = vsub.f32 %v3615_v53, %v4882_v52  ;;  %v677_v27 = vsub.f32 %v3621_v62, %v4885_v44  ;;  %v1569_v38 = vsub.f32 %v3623_v63, %v4891_v25 }
  0xc1   : > { %362 = vst [vmem:[#allocation2 + $0x6] sm:$0x3] %v361_v2  ;;  %v3952_v30 = vpack.c.bf16 %v672_v13, %v660_v24  ;;  %v1576_v8 = vand.u32 4294901760, %v1575_v17  ;;  %v1581_v3 = vsub.f32 %v3627_v5, %v4890_v21  ;;  %v4887_v33 = vand.u32 4294901760, %v3631_v7 }
  0xc2   : > { %v666_v23 = vand.u32 4294901760, %v665_v46  ;;  %v678_v52 = vand.u32 4294901760, %v677_v27  ;;  %v1570_v39 = vand.u32 4294901760, %v1569_v38  ;;  %v4888_v29 = vand.u32 4294901760, %v3634_v12 }
  0xc3   : > { %v3959_v44 = vpack.c.bf16 %v1576_v8, %v1564_v31  ;;  %v1582_v48 = vand.u32 4294901760, %v1581_v3  ;;  %v683_v24 = vsub.f32 %v3631_v7, %v4887_v33  ;;  %v4889_v2 = vand.u32 4294901760, %v3638_v14 }
  0xc4   : > { %v3965_v13 = vpack.c.bf16 %v678_v52, %v666_v23  ;;  %v695_v17 = vsub.f32 %v3634_v12, %v4888_v29  ;;  %v4892_v46 = vand.u32 4294901760, %v3640_v15  ;;  %v4893_v27 = vand.u32 4294901760, %v3647_v35 }
  0xc5   : > { %v3972_v38 = vpack.c.bf16 %v1582_v48, %v1570_v39  ;;  %v684_v31 = vand.u32 4294901760, %v683_v24  ;;  %v1587_v8 = vsub.f32 %v3638_v14, %v4889_v2  ;;  %v4895_v3 = vand.u32 4294901760, %v3649_v36 }
  0xc6   : > { %v696_v33 = vand.u32 4294901760, %v695_v17  ;;  %v1599_v52 = vsub.f32 %v3640_v15, %v4892_v46  ;;  %v689_v23 = vsub.f32 %v3647_v35, %v4893_v27  ;;  %v4899_v29 = vand.u32 4294901760, %v3653_v45 }
  0xc7   : > { %v1588_v48 = vand.u32 4294901760, %v1587_v8  ;;  %v701_v39 = vsub.f32 %v3649_v36, %v4895_v3  ;;  %v4900_v24 = vand.u32 4294901760, %v3655_v50  ;;  %v4901_v2 = vand.u32 4294901760, %v3659_v54 }
  0xc8   : > { %v447_v17 = vld [vmem:[#allocation2] sm:$0xff]  ;;  %v3990_v21 = vpack.c.bf16 %v696_v33, %v684_v31  ;;  %v1600_v25 = vand.u32 4294901760, %v1599_v52  ;;  %v690_v46 = vand.u32 4294901760, %v689_v23  ;;  %v1593_v27 = vsub.f32 %v3653_v45, %v4899_v29 }
  0xc9   : > { %v3995_v9 = vand.u32 4294901760, %v447_v17  ;;  %v702_v8 = vand.u32 4294901760, %v701_v39  ;;  %v1605_v3 = vsub.f32 %v3655_v50, %v4900_v24  ;;  %v707_v16 = vsub.f32 %v3659_v54, %v4901_v2 }
  0xca   : > { %v4003_v19 = vpack.c.bf16 %v1600_v25, %v1588_v48  ;;  %v1594_v33 = vand.u32 4294901760, %v1593_v27  ;;  %v4902_v31 = vand.u32 4294901760, %v3663_v58  ;;  %v4903_v52 = vand.u32 4294901760, %v3667_v60 }
  0xcb   : > { %5078 = vst [vmem:[#allocation92_spill] sm:$0xff] %v3995_v9  ;;  %v4008_v23 = vsub.f32 %v447_v17, %v3995_v9  ;;  %v4010_v55 = vpack.c.bf16 %v702_v8, %v690_v46  ;;  %v1606_v39 = vand.u32 4294901760, %v1605_v3  ;;  %v708_v29 = vand.u32 4294901760, %v707_v16 }
  0xcc   : > { %v719_v24 = vsub.f32 %v3663_v58, %v4902_v31  ;;  %v1611_v25 = vsub.f32 %v3667_v60, %v4903_v52  ;;  %v4906_v27 = vand.u32 4294901760, %v3670_v1  ;;  %v4911_v48 = vand.u32 4294901760, %v3673_v22 }
  0xcd   : > { %5079 = vst [vmem:[#allocation93_spill] sm:$0xff] %v4008_v23  ;;  %v4021_v2 = vand.u32 4294901760, %v4008_v23  ;;  %v4023_v17 = vpack.c.bf16 %v1606_v39, %v1594_v33  ;;  %v4918_v46 = vand.u32 4294901760, %v3677_v37  ;;  %v4919_v16 = vand.u32 4294901760, %v3681_v32 }
  0xce   : > { %v720_v3 = vand.u32 4294901760, %v719_v24  ;;  %v1612_v8 = vand.u32 4294901760, %v1611_v25  ;;  %v1623_v31 = vsub.f32 %v3670_v1, %v4906_v27  ;;  %v713_v52 = vsub.f32 %v3673_v22, %v4911_v48 }
  0xcf   : > { %5080 = vst [vmem:[#allocation94_spill] sm:$0xff] %v4021_v2  ;;  %v613_v9 = vsub.f32 %v4008_v23, %v4021_v2  ;;  %v725_v33 = vsub.f32 %v3677_v37, %v4918_v46  ;;  %v1617_v24 = vsub.f32 %v3681_v32, %v4919_v16  ;;  %v4926_v39 = vand.u32 4294901760, %v3683_v59 }
  0xd0   : > { %v4042_v25 = vpack.c.bf16 %v720_v3, %v708_v29  ;;  %v1624_v27 = vand.u32 4294901760, %v1623_v31  ;;  %v714_v51 = vand.u32 4294901760, %v713_v52  ;;  %v4925_v49 = vand.u32 4294901760, %v3687_v6  ;;  %v5081_v29 = vld [vmem:[#allocation48_spill] sm:$0xff]  ;;  %v5082_v52 = vld [vmem:[#allocation50_spill] sm:$0xff] }
  0xd1   : > { %v614_v48 = vand.u32 4294901760, %v613_v9  ;;  %v726_v47 = vand.u32 4294901760, %v725_v33  ;;  %v1618_v42 = vand.u32 4294901760, %v1617_v24  ;;  %v1629_v2 = vsub.f32 %v3683_v59, %v4926_v39  ;;  %v5083_v24 = vld [vmem:[#allocation52_spill] sm:$0xff] }
  0xd2   : > { %v2862_v46 = vpack.c.bf16 %v1624_v27, %v1612_v8  ;;  %v731_v16 = vsub.f32 %v3687_v6, %v4925_v49  ;;  %v4924_v23 = vand.u32 4294901760, %v3689_v4  ;;  %v4927_v3 = vand.u32 4294901760, %v5081_v29 }
  0xd3   : > { %615 = vmatmul.mubr.f32.vlgmr.msra.gmra.mrb[0].mxu0 %v614_v48  ;;  %1519 = vmatmul.mubr.f32.vlgmr.msra.gmra.mrb[0].mxu1 %v614_v48  ;;  %v4053_v31 = vpack.c.bf16 %v726_v47, %v714_v51  ;;  %v1630_v9 = vand.u32 4294901760, %v1629_v2  ;;  %v4931_v33 = vand.u32 4294901760, %v5082_v52  ;;  %v4930_v41 = vand.u32 4294901760, %v5083_v24  ;;  %v5084_v47 = vld [vmem:[#allocation53_spill] sm:$0xff] }
  0xd4   : > { %2661 = vmatpush1.bf16.msra.mxu0 %v3924_v18  ;;  %2853 = vmatpush1.bf16.msra.mxu1 %v3927_v0  ;;  %v732_v27 = vand.u32 4294901760, %v731_v16  ;;  %v743_v8 = vsub.f32 %v3689_v4, %v4924_v23  ;;  %v1635_v48 = vsub.f32 %v5081_v29, %v4927_v3  ;;  %v4934_v51 = vand.u32 4294901760, %v5084_v47  ;;  %v5085_v16 = vld [vmem:[#allocation55_spill] sm:$0xff] }
  0xd5   : > { %2663 = vmatprep.subr.bf16.mxu0 %v3952_v30  ;;  %2855 = vmatprep.subr.bf16.mxu1 %v3959_v44  ;;  %v2864_v2 = vpack.c.bf16 %v1630_v9, %v1618_v42  ;;  %v1647_v0 = vsub.f32 %v5082_v52, %v4931_v33  ;;  %v737_v18 = vsub.f32 %v5083_v24, %v4930_v41  ;;  %v4938_v23 = vand.u32 4294901760, %v5085_v16  ;;  %v5086_v30 = vld [vmem:[#allocation56_spill] sm:$0xff]  ;;  %v5088_v33 = vld [vmem:[#allocation58_spill] sm:$0xff] }
  0xd6   : > { %v744_v49 = vand.u32 4294901760, %v743_v8  ;;  %v1636_v39 = vand.u32 4294901760, %v1635_v48  ;;  %v749_v3 = vsub.f32 %v5084_v47, %v4934_v51  ;;  %v4939_v40 = vand.u32 4294901760, %v5086_v30 }
  0xd7   : > { %v5087_v44 = vmov 0.0   ;;  %v1648_v42 = vand.u32 4294901760, %v1647_v0  ;;  %v738_v9 = vand.u32 4294901760, %v737_v18  ;;  %v1641_v41 = vsub.f32 %v5085_v16, %v4938_v23  ;;  %v5090_v23 = vld [vmem:[#allocation60_spill] sm:$0xff] }
  0xd8   : > { %620 = vmatprep.mubr.f32.mxu0 %v5087_v44  ;;  %1524 = vmatprep.mubr.f32.mxu1 %v5087_v44  ;;  %v4944_v28 = vand.u32 4294901760, %v5088_v33  ;;  %v2674_v8 = vpack.c.bf16 %v744_v49, %v732_v27  ;;  %v750_v48 = vand.u32 4294901760, %v749_v3  ;;  %v1653_v51 = vsub.f32 %v5086_v30, %v4939_v40 }
  0xd9   : > { %2665 = vmatpush1.bf16.msra.mxu0 %v3965_v13  ;;  %2857 = vmatpush1.bf16.msra.mxu1 %v3972_v38  ;;  %v4942_v44 = vand.u32 4294901760, %v5089_v26  ;;  %v2866_v0 = vpack.c.bf16 %v1648_v42, %v1636_v39  ;;  %v1642_v18 = vand.u32 4294901760, %v1641_v41  ;;  %v4941_v38 = vand.u32 4294901760, %v5090_v23 }
  0xda   : > { %2667 = vmatprep.subr.bf16.mxu0 %v3990_v21  ;;  %2859 = vmatprep.subr.bf16.mxu1 %v4003_v19  ;;  %v755_v13 = vsub.f32 %v5088_v33, %v4944_v28  ;;  %v2676_v49 = vpack.c.bf16 %v750_v48, %v738_v9  ;;  %v1654_v3 = vand.u32 4294901760, %v1653_v51  ;;  %v4943_v40 = vand.u32 4294901760, %v3726_v61  ;;  %v5091_v21 = vld [vmem:[#allocation65_spill] sm:$0xff]  ;;  %v5092_v48 = vld [vmem:[#allocation67_spill] sm:$0xff]  ;;  %v5094_v28 = vld [vmem:[#allocation70_spill] sm:$0xff] }
  0xdb   : > { %v767_v27 = vsub.f32 %v5089_v26, %v4942_v44  ;;  %v1659_v19 = vsub.f32 %v5090_v23, %v4941_v38  ;;  %v4945_v41 = vand.u32 4294901760, %v3730_v20  ;;  %v4950_v39 = vand.u32 4294901760, %v5091_v21 }
  0xdc   : > { %v756_v30 = vand.u32 4294901760, %v755_v13  ;;  %v2868_v51 = vpack.c.bf16 %v1654_v3, %v1642_v18  ;;  %v1671_v9 = vsub.f32 %v3726_v61, %v4943_v40  ;;  %v4951_v13 = vand.u32 4294901760, %v5092_v48 }
  0xdd   : > { %2669 = vmatpush1.bf16.msra.mxu0 %v4010_v55  ;;  %2861 = vmatpush1.bf16.msra.mxu1 %v4023_v17  ;;  %v768_v42 = vand.u32 4294901760, %v767_v27  ;;  %v1660_v38 = vand.u32 4294901760, %v1659_v19  ;;  %v761_v44 = vsub.f32 %v3730_v20, %v4945_v41  ;;  %v773_v55 = vsub.f32 %v5091_v21, %v4950_v39  ;;  %v5093_v17 = vld [vmem:[#allocation68_spill] sm:$0xff]  ;;  %v5095_v20 = vld [vmem:[#allocation71_spill] sm:$0xff] }
  0xde   : > { %2671 = vmatprep.subr.bf16.mxu0 %v4042_v25  ;;  %2863 = vmatprep.subr.bf16.mxu1 %v2862_v46  ;;  %v4952_v18 = vand.u32 4294901760, %v5093_v17  ;;  %v1672_v27 = vand.u32 4294901760, %v1671_v9  ;;  %v1665_v40 = vsub.f32 %v5092_v48, %v4951_v13  ;;  %v4958_v25 = vand.u32 4294901760, %v5094_v28  ;;  %v5096_v9 = vld [vmem:[#allocation72_spill] sm:$0xff] }
  0xdf   : > { %v2678_v3 = vpack.c.bf16 %v768_v42, %v756_v30  ;;  %v762_v46 = vand.u32 4294901760, %v761_v44  ;;  %v774_v19 = vand.u32 4294901760, %v773_v55  ;;  %v4956_v61 = vand.u32 4294901760, %v5095_v20 }
  0xe0   : > { %v1677_v41 = vsub.f32 %v5093_v17, %v4952_v18  ;;  %v2870_v39 = vpack.c.bf16 %v1672_v27, %v1660_v38  ;;  %v1666_v30 = vand.u32 4294901760, %v1665_v40  ;;  %v779_v42 = vsub.f32 %v5094_v28, %v4958_v25 }
  0xe1   : > { %2673 = vmatpush1.bf16.msra.mxu0 %v4053_v31  ;;  %2865 = vmatpush1.bf16.msra.mxu1 %v2864_v2  ;;  %v4954_v13 = vand.u32 4294901760, %v5096_v9  ;;  %v2680_v44 = vpack.c.bf16 %v774_v19, %v762_v46  ;;  %v791_v18 = vsub.f32 %v5095_v20, %v4956_v61  ;;  %v4955_v17 = vand.u32 4294901760, %v3760_v34  ;;  %v5098_v46 = vld [vmem:[#allocation78_spill] sm:$0xff] }
  0xe2   : > { %2675 = vmatprep.subr.bf16.mxu0 %v2674_v8  ;;  %2867 = vmatprep.subr.bf16.mxu1 %v2866_v0  ;;  %v1678_v55 = vand.u32 4294901760, %v1677_v41  ;;  %v780_v40 = vand.u32 4294901760, %v779_v42  ;;  %v4957_v2 = vand.u32 4294901760, %v3764_v10  ;;  %v5097_v8 = vld [vmem:[#allocation76_spill] sm:$0xff]  ;;  %v4960_v19 = vand.u32 4294901760, %v5098_v46 }
  0xe3   : > { %v1683_v31 = vsub.f32 %v5096_v9, %v4954_v13  ;;  %v4959_v0 = vand.u32 4294901760, %v5097_v8  ;;  %v792_v41 = vand.u32 4294901760, %v791_v18  ;;  %v1695_v27 = vsub.f32 %v3760_v34, %v4955_v17 }
  0xe4   : > { %v2872_v38 = vpack.c.bf16 %v1678_v55, %v1666_v30  ;;  %v785_v13 = vsub.f32 %v3764_v10, %v4957_v2  ;;  %v5099_v30 = vld [vmem:[#allocation79_spill] sm:$0xff] }
  0xe5   : > { %2677 = vmatpush1.bf16.msra.mxu0 %v2676_v49  ;;  %2869 = vmatpush1.bf16.msra.mxu1 %v2868_v51  ;;  %v1684_v42 = vand.u32 4294901760, %v1683_v31  ;;  %v797_v18 = vsub.f32 %v5097_v8, %v4959_v0  ;;  %v4964_v55 = vand.u32 4294901760, %v5099_v30  ;;  %v2682_v17 = vpack.c.bf16 %v792_v41, %v780_v40  ;;  %v5100_v51 = vld [vmem:[#allocation81_spill] sm:$0xff] }
  0xe6   : > { %2679 = vmatprep.subr.bf16.mxu0 %v2678_v3  ;;  %2871 = vmatprep.subr.bf16.mxu1 %v2870_v39  ;;  %v1696_v61 = vand.u32 4294901760, %v1695_v27  ;;  %v1689_v49 = vsub.f32 %v5098_v46, %v4960_v19  ;;  %v4962_v31 = vand.u32 4294901760, %v5100_v51  ;;  %v786_v2 = vand.u32 4294901760, %v785_v13  ;;  %v5101_v3 = vld [vmem:[#allocation82_spill] sm:$0xff]  ;;  %v5102_v19 = vld [vmem:[#allocation83_spill] sm:$0xff] }
  0xe7   : > { %v798_v25 = vand.u32 4294901760, %v797_v18  ;;  %v1701_v0 = vsub.f32 %v5099_v30, %v4964_v55  ;;  %v4963_v39 = vand.u32 4294901760, %v5101_v3  ;;  %v4965_v46 = vand.u32 4294901760, %v5102_v19 }
  0xe8   : > { %v2874_v40 = vpack.c.bf16 %v1696_v61, %v1684_v42  ;;  %v1690_v41 = vand.u32 4294901760, %v1689_v49  ;;  %v803_v27 = vsub.f32 %v5100_v51, %v4962_v31  ;;  %v5103_v42 = vld [vmem:[#allocation85_spill] sm:$0xff] }
  0xe9   : > { %2681 = vmatpush1.bf16.msra.mxu0 %v2680_v44  ;;  %2873 = vmatpush1.bf16.msra.mxu1 %v2872_v38  ;;  %v2684_v13 = vpack.c.bf16 %v798_v25, %v786_v2  ;;  %v1702_v18 = vand.u32 4294901760, %v1701_v0  ;;  %v815_v61 = vsub.f32 %v5101_v3, %v4963_v39  ;;  %v4966_v49 = vand.u32 4294901760, %v5103_v42 }
  0xea   : > { %2683 = vmatprep.subr.bf16.mxu0 %v2682_v17  ;;  %2875 = vmatprep.subr.bf16.mxu1 %v2874_v40  ;;  %v804_v31 = vand.u32 4294901760, %v803_v27  ;;  %v1707_v25 = vsub.f32 %v5102_v19, %v4965_v46  ;;  %v364_v44 = vstv %s4137_s9  ;;  %v367_v2 = vstv %s4139_s12  ;;  %s4212_s9 = sld [smem:[#allocation7 + $0x381]]  ;;  %s4214_s12 = sld [smem:[#allocation7 + $0x382]] }
  0xeb   : > { %v2876_v0 = vpack.c.bf16 %v1702_v18, %v1690_v41  ;;  %v816_v38 = vand.u32 4294901760, %v815_v61  ;;  %v1719_v39 = vsub.f32 %v5103_v42, %v4966_v49  ;;  %v365_v55 = vmul.f32 %v364_v44, %v3821_v57 }
  0xec   : > { %v1708_v17 = vand.u32 4294901760, %v1707_v25  ;;  %v368_v40 = vmul.f32 %v367_v2, %v3824_v11  ;;  %v371_v27 = vstv %s4150_s13  ;;  %v375_v46 = vstv %s4152_s7  ;;  %s4222_s13 = sld [smem:[#allocation8 + $0x6]]  ;;  %s4224_s7 = sld [smem:[#allocation7 + $0x383]] }
  0xed   : > { %2685 = vmatpush1.bf16.msra.mxu0 %v2684_v13  ;;  %2877 = vmatpush1.bf16.msra.mxu1 %v2876_v0  ;;  %v2686_v41 = vpack.c.bf16 %v816_v38, %v804_v31  ;;  %v1720_v18 = vand.u32 4294901760, %v1719_v39  ;;  %v372_v61 = vmul.f32 %v371_v27, %v3839_v43  ;;  %v376_v44 = vmul.f32 %v375_v46, %v3842_v56 }
  0xee   : > { %v369_v25 = vadd.f32 %v368_v40, %v365_v55  ;;  %v385_v2 = vstv %s4165_s27  ;;  %v388_v49 = vstv %s4167_s10  ;;  %v392_v0 = vstv %s4173_s14  ;;  %s4235_s27 = sld [smem:[#allocation8 + $0x7]]  ;;  %s2573_s10 = sshll.u32 %s3551_s28, 6 }
  0xef   : > { %2687 = vmatprep.subr.bf16.mxu0 %v2686_v41  ;;  %v2878_v13 = vpack.c.bf16 %v1720_v18, %v1708_v17  ;;  %v386_v31 = vmul.f32 %v385_v2, %v3821_v57  ;;  %v389_v39 = vmul.f32 %v388_v49, %v3824_v11  ;;  %v379_v38 = vstv %s4179_s5  ;;  %s2625_s14 = sshll.u32 %s3324_s18, 10  ;;  %s274_s5 = scalar_lea.vmem [#allocation12], %s2573_s10 }
  0xf0   : > { %v373_v55 = vadd.f32 %v372_v61, %v369_v25  ;;  %v393_v46 = vmul.f32 %v392_v0, %v3839_v43  ;;  %v396_v40 = vstv %s4181_s6  ;;  %v406_v41 = vstv %s4187_s8  ;;  %s2440_s6 = sshll.u32 %s274_s5, 4  ;;  %s2425_s18 = scalar_lea.sflag [#allocation5], %s3551_s28  ;;  %s4721_s6 = int_to_ptr.vmem [resolvable:$true] %s2440_s6 }
  0xf1   : > { %2879 = vmatprep.subr.bf16.mxu1 %v2878_v13  ;;  %v390_v27 = vadd.f32 %v389_v39, %v386_v31  ;;  %v397_v17 = vmul.f32 %v396_v40, %v3842_v56  ;;  %v409_v49 = vstv %s4189_s23  ;;  %v407_v2 = vmul.f32 %v406_v41, %v3821_v57 }
  0xf2   : > { %v377_v18 = vadd.f32 %v376_v44, %v373_v55  ;;  %v410_v42 = vmul.f32 %v409_v49, %v3824_v11  ;;  %v413_v61 = vstv %s4196_s25  ;;  %v400_v0 = vstv %s4202_s30  ;;  %s4719_s25 = scalar_lea.hbm %s4774_s4, %s2625_s14  ;;  %s3238_s30 = scalar_lea.vmem %s4721_s6, 1024 }
  0xf3   : > { %v394_v25 = vadd.f32 %v393_v46, %v390_v27  ;;  %v414_v13 = vmul.f32 %v413_v61, %v3839_v43  ;;  %v417_v31 = vstv %s4204_s11  ;;  %v427_v44 = vstv %s4209_s24  ;;  %p3239_p1 = scmp.ne.s32.totalorder %s4721_s6, %s3238_s30  ;;  %s3343_s11 = smov [#allocation12]  }
  0xf4   : > { %v380_v39 = vadd.f32 %v379_v38, %v377_v18  ;;  %v411_v40 = vadd.f32 %v410_v42, %v407_v2  ;;  %v418_v19 = vmul.f32 %v417_v31, %v3842_v56  ;;  %v428_v41 = vmul.f32 %v427_v44, %v3821_v57  ;;  %v5104_v38 = vld [vmem:[#allocation87_spill] sm:$0xff]  ;;  %s3242_s24 = sshll.u32 %s3343_s11, 4  ;;  %s3243_s24 = int_to_ptr.vmem [resolvable:$false] %s3242_s24 }
  0xf5   : > { %v398_v55 = vadd.f32 %v397_v17, %v394_v25  ;;  %v430_v3 = vstv %s4212_s9  ;;  %v434_v49 = vstv %s4214_s12  ;;  %v421_v8 = vstv %s4222_s13  ;;  %p3240_p6 = pnand %p3239_p1, %p3491_p2  ;;  %s3244_s9 = scalar_lea.vmem %s3243_s24, 2048 }
  0xf6   : > { %v381_v51 = vmul.f32 0.1, %v380_v39  ;;  %v415_v30 = vadd.f32 %v414_v13, %v411_v40  ;;  %v431_v46 = vmul.f32 %v430_v3, %v3824_v11  ;;  %v435_v27 = vmul.f32 %v434_v49, %v3839_v43  ;;  %v5105_v13 = vld [vmem:[#allocation88_spill] sm:$0xff]  ;;  %v5106_v3 = vld [vmem:[#allocation90_spill] sm:$0xff]  ;;  %p3245_p8 = scmp.lt.s32.totalorder %s4721_s6, %s3243_s24  ;;  %p3246_p3 = scmp.lt.s32.totalorder %s3244_s9, %s3238_s30 }
  0xf7   : > { %v401_v61 = vadd.f32 %v400_v0, %v398_v55  ;;  %v438_v10 = vstv %s4224_s7  ;;  %v4976_v42 = vand.u32 4294901760, %v5104_v38  ;;  %v4975_v11 = vand.u32 4294901760, %v5105_v13  ;;  %v5107_v55 = vld [vmem:[#allocation91_spill] sm:$0xff]  ;;  %p3241_p4 = pneg %p3240_p6 }
  0xf8   : > { %v382_v18 = vmax.f32 %v380_v39, %v381_v51  ;;  %v419_v2 = vadd.f32 %v418_v19, %v415_v30  ;;  %v432_v31 = vadd.f32 %v431_v46, %v428_v41  ;;  %v439_v17 = vmul.f32 %v438_v10, %v3842_v56  ;;  %p3247_p5 = por %p3246_p3, %p3245_p8 }
  0xf9   : > { %v402_v57 = vmul.f32 0.1, %v401_v61  ;;  %v809_v25 = vsub.f32 %v5104_v38, %v4976_v42  ;;  %v4979_v43 = vand.u32 4294901760, %v5106_v3  ;;  %v442_v44 = vstv %s4235_s27  ;;  %v5111_v42 = vld [vmem:[#allocation23_spill] sm:$0xff] }
  0xfa   : > { %383 = vst [vmem:[#allocation2 + $0x8] sm:$0x3] %v382_v18  ;;  %v422_v0 = vadd.f32 %v421_v8, %v419_v2  ;;  %v436_v40 = vadd.f32 %v435_v27, %v432_v31  ;;  %v4978_v49 = vand.u32 4294901760, %v5107_v55  ;;  %v821_v10 = vsub.f32 %v5105_v13, %v4975_v11  ;;  %v5108_v2 = vld [vmem:[#allocation19_spill] sm:$0xff]  ;;  %v5109_v31 = vld [vmem:[#allocation20_spill] sm:$0xff]  ;;  %v5110_v11 = vld [vmem:[#allocation21_spill] sm:$0xff]  ;;  %p3248_p10 = pnand %p3247_p5, %p3241_p4 }
  0xfb   : > { %v403_v51 = vmax.f32 %v401_v61, %v402_v57  ;;  %v810_v19 = vand.u32 4294901760, %v809_v25  ;;  %v1713_v56 = vsub.f32 %v5106_v3, %v4979_v43  ;;  %v2690_v57 = vpack.c.bf16 %v5109_v31, %v5108_v2 }
  0xfc   : > { %v423_v30 = vmul.f32 0.1, %v422_v0  ;;  %v440_v39 = vadd.f32 %v439_v17, %v436_v40  ;;  %v1725_v8 = vsub.f32 %v5107_v55, %v4978_v49  ;;  %v822_v41 = vand.u32 4294901760, %v821_v10  ;;  %v5122_v40 = vld [vmem:[#allocation83_spill] sm:$0xff] }
  0xfd   : > { %404 = vst [vmem:[#allocation2 + $0xa] sm:$0x3] %v403_v51  ;;  %v1714_v46 = vand.u32 4294901760, %v1713_v56  ;;  %v2882_v13 = vpack.c.bf16 %v5111_v42, %v5110_v11  ;;  %v5118_v56 = vld [vmem:[#allocation78_spill] sm:$0xff]  ;;  %v5126_v43 = vand.u32 4294901760, %v3655_v50  ;;  %v5129_v42 = vand.u32 4294901760, %v3663_v58 }
  0xfe   : > { %v424_v27 = vmax.f32 %v422_v0, %v423_v30  ;;  %v443_v61 = vadd.f32 %v442_v44, %v440_v39  ;;  %v1726_v18 = vand.u32 4294901760, %v1725_v8  ;;  %v2688_v25 = vpack.c.bf16 %v822_v41, %v810_v19  ;;  %v5120_v44 = vld [vmem:[#allocation81_spill] sm:$0xff]  ;;  %v5124_v39 = vld [vmem:[#allocation88_spill] sm:$0xff] }
  0xff   : > { %v5123_v41 = vld [vmem:[#allocation85_spill] sm:$0xff]  ;;  %v5128_v19 = vand.u32 4294901760, %v3659_v54  ;;  %v5131_v17 = vand.u32 4294901760, %v3667_v60  ;;  %v5132_v11 = vand.u32 4294901760, %v3670_v1  ;;  %v5135_v31 = vand.u32 4294901760, %v3677_v37 }
 0x100   : > { %425 = vst [vmem:[#allocation2 + $0xc] sm:$0x3] %v424_v27  ;;  %v444_v51 = vmul.f32 0.1, %v443_v61  ;;  %v2880_v10 = vpack.c.bf16 %v1726_v18, %v1714_v46  ;;  %2689 = vmatpush1.bf16.msra.mxu0 %v2688_v25  ;;  %v5115_v27 = vld [vmem:[#allocation68_spill] sm:$0xff]  ;;  %v5121_v46 = vld [vmem:[#allocation82_spill] sm:$0xff] }
 0x101   : > { %2691 = vmatprep.subr.bf16.mxu0 %v2690_v57  ;;  %v5119_v57 = vld [vmem:[#allocation79_spill] sm:$0xff]  ;;  %v5125_v25 = vand.u32 4294901760, %v3653_v45  ;;  %v4333_v0 = vpack.c.bf16 %v5129_v42, %v5128_v19  ;;  %v4339_v49 = vpack.c.bf16 %v5132_v11, %v5131_v17  ;;  %v5134_v18 = vand.u32 4294901760, %v3673_v22 }
 0x102   : > { %v445_v8 = vmax.f32 %v443_v61, %v444_v51  ;;  %2881 = vmatpush1.bf16.msra.mxu1 %v2880_v10  ;;  %v5112_v61 = vld [vmem:[#allocation56_spill] sm:$0xff]  ;;  %v5113_v10 = vld [vmem:[#allocation62_spill] sm:$0xff]  ;;  %v5116_v51 = vld [vmem:[#allocation75_spill] sm:$0xff]  ;;  %v5140_v19 = vand.u32 4294901760, %v3687_v6  ;;  %v5143_v11 = vand.u32 4294901760, %v5081_v29  ;;  %v5144_v17 = vand.u32 4294901760, %v5082_v52 }
 0x103   : > { %2883 = vmatprep.subr.bf16.mxu1 %v2882_v13  ;;  %v5114_v13 = vld [vmem:[#allocation64_spill] sm:$0xff]  ;;  %v4327_v30 = vpack.c.bf16 %v5126_v43, %v5125_v25  ;;  %5130 = vst [vmem:[#allocation50_spill] sm:$0xff] %v4333_v0  ;;  %5133 = vst [vmem:[#allocation52_spill] sm:$0xff] %v4339_v49  ;;  %v4345_v2 = vpack.c.bf16 %v5135_v31, %v5134_v18  ;;  %v5137_v43 = vand.u32 4294901760, %v3681_v32  ;;  %v5138_v25 = vand.u32 4294901760, %v3683_v59 }
 0x104   : > { %446 = vst [vmem:[#allocation2 + $0xe] sm:$0x3] %v445_v8  ;;  %v5117_v8 = vld [vmem:[#allocation76_spill] sm:$0xff]  ;;  %v5141_v0 = vand.u32 4294901760, %v3689_v4  ;;  %v4363_v49 = vpack.c.bf16 %v5144_v17, %v5143_v11  ;;  %v5146_v31 = vand.u32 4294901760, %v5083_v24  ;;  %v5147_v18 = vand.u32 4294901760, %v5084_v47 }
 0x105   : > { %5127 = vst [vmem:[#allocation48_spill] sm:$0xff] %v4327_v30  ;;  %5136 = vst [vmem:[#allocation53_spill] sm:$0xff] %v4345_v2  ;;  %v4351_v30 = vpack.c.bf16 %v5138_v25, %v5137_v43  ;;  %v5149_v43 = vand.u32 4294901760, %v5085_v16  ;;  %v5150_v25 = vand.u32 4294901760, %v5112_v61  ;;  %v5156_v17 = vand.u32 4294901760, %v5090_v23 }
 0x106   : > { %v4357_v60 = vpack.c.bf16 %v5141_v0, %v5140_v19  ;;  %5145 = vst [vmem:[#allocation60_spill] sm:$0xff] %v4363_v49  ;;  %v4369_v2 = vpack.c.bf16 %v5147_v18, %v5146_v31  ;;  %v5153_v19 = vand.u32 4294901760, %v5088_v33  ;;  %v5157_v49 = vand.u32 4294901760, %v5113_v10 }
 0x107   : > { %5139 = vst [vmem:[#allocation55_spill] sm:$0xff] %v4351_v30  ;;  %v4375_v30 = vpack.c.bf16 %v5150_v25, %v5149_v43  ;;  %v5159_v18 = vand.u32 4294901760, %v5114_v13  ;;  %v5162_v25 = vand.u32 4294901760, %v5092_v48 }
 0x108   : > { %5142 = vst [vmem:[#allocation59_spill] sm:$0xff] %v4357_v60  ;;  %5148 = vst [vmem:[#allocation65_spill] sm:$0xff] %v4369_v2  ;;  %v5154_v60 = vand.u32 4294901760, %v5089_v26  ;;  %v4389_v31 = vpack.c.bf16 %v5157_v49, %v5156_v17  ;;  %v5160_v2 = vand.u32 4294901760, %v5091_v21  ;;  %v5168_v49 = vand.u32 4294901760, %v5096_v9 }
 0x109   : > { %5151 = vst [vmem:[#allocation67_spill] sm:$0xff] %v4375_v30  ;;  %v5163_v30 = vand.u32 4294901760, %v5115_v27  ;;  %v5169_v17 = vand.u32 4294901760, %v3760_v34 }
 0x10a   : > { %v4383_v11 = vpack.c.bf16 %v5154_v60, %v5153_v19  ;;  %5158 = vst [vmem:[#allocation72_spill] sm:$0xff] %v4389_v31  ;;  %v4395_v43 = vpack.c.bf16 %v5160_v2, %v5159_v18  ;;  %v5165_v60 = vand.u32 4294901760, %v5094_v28  ;;  %v5166_v19 = vand.u32 4294901760, %v5095_v20 }
 0x10b   : > { %v448_v42 = vld [vmem:[#allocation2 + $0x8] sm:$0xff]  ;;  %v4401_v33 = vpack.c.bf16 %v5163_v30, %v5162_v25  ;;  %v4413_v31 = vpack.c.bf16 %v5169_v17, %v5168_v49  ;;  %v5171_v2 = vand.u32 4294901760, %v5116_v51  ;;  %v5172_v18 = vand.u32 4294901760, %v5117_v8 }
 0x10c   : > { %v4377_v0 = vand.u32 4294901760, %v448_v42  ;;  %5155 = vst [vmem:[#allocation71_spill] sm:$0xff] %v4383_v11  ;;  %5161 = vst [vmem:[#allocation56_spill] sm:$0xff] %v4395_v43  ;;  %v4407_v11 = vpack.c.bf16 %v5166_v19, %v5165_v60  ;;  %v5174_v25 = vand.u32 4294901760, %v5118_v56  ;;  %v5175_v60 = vand.u32 4294901760, %v5119_v57 }
 0x10d   : > { %5164 = vst [vmem:[#allocation62_spill] sm:$0xff] %v4401_v33  ;;  %5170 = vst [vmem:[#allocation68_spill] sm:$0xff] %v4413_v31  ;;  %v4419_v43 = vpack.c.bf16 %v5172_v18, %v5171_v2  ;;  %v5178_v49 = vand.u32 4294901760, %v5121_v46  ;;  %v5180_v31 = vand.u32 4294901760, %v5122_v40  ;;  %v5181_v2 = vand.u32 4294901760, %v5123_v41 }
 0x10e   : > { %5152 = vst [vmem:[#allocation70_spill] sm:$0xff] %v4377_v0  ;;  %5167 = vst [vmem:[#allocation64_spill] sm:$0xff] %v4407_v11  ;;  %v4422_v30 = vsub.f32 %v448_v42, %v4377_v0  ;;  %v4428_v19 = vpack.c.bf16 %v5175_v60, %v5174_v25  ;;  %v5177_v11 = vand.u32 4294901760, %v5120_v44  ;;  %v5183_v42 = vand.u32 4294901760, %v5104_v38  ;;  %v5198_v38 = vld [vmem:[#allocation35_spill] sm:$0xff] }
 0x10f   : > { %5173 = vst [vmem:[#allocation75_spill] sm:$0xff] %v4419_v43  ;;  %v4440_v18 = vpack.c.bf16 %v5181_v2, %v5180_v31  ;;  %v5184_v43 = vand.u32 4294901760, %v5124_v39  ;;  %v5186_v25 = vand.u32 4294901760, %v5106_v3  ;;  %v5187_v60 = vand.u32 4294901760, %v5107_v55  ;;  %v5197_v55 = vld [vmem:[#allocation34_spill] sm:$0xff] }
 0x110   : > { %5176 = vst [vmem:[#allocation76_spill] sm:$0xff] %v4428_v19  ;;  %v4434_v17 = vpack.c.bf16 %v5178_v49, %v5177_v11  ;;  %v4455_v11 = vand.u32 4294901760, %v4422_v30  ;;  %v5190_v2 = vmov 0.0   ;;  %v2886_v39 = vpack.c.bf16 %v5198_v38, %v5197_v55 }
 0x111   : > { %5182 = vst [vmem:[#allocation79_spill] sm:$0xff] %v4440_v18  ;;  %v4446_v33 = vpack.c.bf16 %v5184_v43, %v5183_v42  ;;  %v4452_v19 = vpack.c.bf16 %v5187_v60, %v5186_v25  ;;  %v5191_v43 = vld [vmem:[#allocation25_spill] sm:$0xff]  ;;  %v5192_v42 = vld [vmem:[#allocation26_spill] sm:$0xff]  ;;  %v5193_v18 = vld [vmem:[#allocation28_spill] sm:$0xff] }
 0x112   : > { %5179 = vst [vmem:[#allocation78_spill] sm:$0xff] %v4434_v17  ;;  %5189 = vst [vmem:[#allocation83_spill] sm:$0xff] %v4455_v11  ;;  %v624_v49 = vsub.f32 %v4422_v30, %v4455_v11  ;;  %v5194_v17 = vld [vmem:[#allocation29_spill] sm:$0xff]  ;;  %v5195_v60 = vld [vmem:[#allocation30_spill] sm:$0xff] }
 0x113   : > { %5185 = vst [vmem:[#allocation81_spill] sm:$0xff] %v4446_v33  ;;  %5188 = vst [vmem:[#allocation82_spill] sm:$0xff] %v4452_v19  ;;  %v2692_v33 = vpack.c.bf16 %v5192_v42, %v5191_v43  ;;  %v2884_v25 = vpack.c.bf16 %v5194_v17, %v5193_v18  ;;  %v5196_v19 = vld [vmem:[#allocation32_spill] sm:$0xff] }
 0x114   : > { %v625_v31 = vand.u32 4294901760, %v624_v49  ;;  %v2694_v3 = vpack.c.bf16 %v5196_v19, %v5195_v60  ;;  %v5199_v11 = vld [vmem:[#allocation92_spill] sm:$0xff]  ;;  %v5200_v49 = vpack.c.bf16 %v3621_v62, %v3615_v53 }
 0x116   : > { %626 = vmatmul.mubr.f32.gmra.mrb[2].mxu0 %v625_v31  ;;  %1530 = vmatmul.mubr.f32.gmra.mrb[2].mxu1 %v625_v31  ;;  %v5201_v31 = vpack.c.bf16 %v3627_v5, %v3623_v63 }
 0x117   : > { %856 = vmatprep.mubr.f32.mxu0 %v5190_v2  ;;  %1760 = vmatprep.mubr.f32.mxu1 %v5190_v2 }
 0x11a   : > { %858 = vmatmul.mubr.f32.vlgmr.msra.gmra.mrb[0].mxu0 %v5199_v11  ;;  %1762 = vmatmul.mubr.f32.vlgmr.msra.gmra.mrb[0].mxu1 %v5199_v11 }
 0x11b   : > { %2693 = vmatpush1.bf16.msra.mxu0 %v2692_v33  ;;  %2885 = vmatpush1.bf16.msra.mxu1 %v2884_v25  ;;  %v5202_v33 = vpack.c.bf16 %v3634_v12, %v3631_v7  ;;  %v5205_v25 = vpack.c.bf16 %v3655_v50, %v3653_v45  ;;  %v5211_v45 = vpack.c.bf16 %v3689_v4, %v3687_v6 }
 0x11c   : > { %2695 = vmatprep.subr.bf16.mxu0 %v2694_v3  ;;  %2887 = vmatprep.subr.bf16.mxu1 %v2886_v39  ;;  %v5203_v3 = vpack.c.bf16 %v3640_v15, %v3638_v14  ;;  %v5204_v39 = vpack.c.bf16 %v3649_v36, %v3647_v35  ;;  %v5212_v50 = vpack.c.bf16 %v5082_v52, %v5081_v29  ;;  %v5227_v52 = vld [vmem:[#allocation87_spill] sm:$0xff] }
 0x11d   : > { %863 = vmatprep.mubr.f32.mxu0 %v5190_v2  ;;  %1767 = vmatprep.mubr.f32.mxu1 %v5190_v2  ;;  %v5217_v4 = vpack.c.bf16 %v5113_v10, %v5090_v23  ;;  %v5218_v6 = vpack.c.bf16 %v5091_v21, %v5114_v13  ;;  %v5223_v23 = vpack.c.bf16 %v5119_v57, %v5118_v56  ;;  %v5232_v21 = vld [vmem:[#allocation18_spill] sm:$0xff]  ;;  %v5237_v56 = vld [vmem:[#allocation31_spill] sm:$0xff]  ;;  %v5243_v57 = vld [vmem:[#allocation40_spill] sm:$0xff] }
 0x11e   : > { %865 = vmatmul.mubr.f32.gmra.mrb[2].mxu0 %v4377_v0  ;;  %1769 = vmatmul.mubr.f32.gmra.mrb[2].mxu1 %v4377_v0  ;;  %v5210_v0 = vpack.c.bf16 %v3683_v59, %v3681_v32  ;;  %v5222_v32 = vpack.c.bf16 %v5117_v8, %v5116_v51  ;;  %v5224_v29 = vpack.c.bf16 %v5121_v46, %v5120_v44  ;;  %v5235_v44 = vld [vmem:[#allocation24_spill] sm:$0xff]  ;;  %v5242_v51 = vld [vmem:[#allocation39_spill] sm:$0xff]  ;;  %v5244_v10 = vld [vmem:[#allocation41_spill] sm:$0xff] }
 0x11f   : > { %2697 = vmatpush1.bf16.msra.mxu0 %v5200_v49  ;;  %2889 = vmatpush1.bf16.msra.mxu1 %v5201_v31  ;;  %v5206_v49 = vpack.c.bf16 %v3663_v58, %v3659_v54  ;;  %v5207_v31 = vld [vmem:[#allocation44_spill] sm:$0xff]  ;;  %v5213_v54 = vpack.c.bf16 %v5084_v47, %v5083_v24  ;;  %v5215_v58 = vld [vmem:[#allocation58_spill] sm:$0xff]  ;;  %v5229_v24 = vld [vmem:[#allocation91_spill] sm:$0xff] }
 0x120   : > { %2699 = vmatprep.subr.bf16.mxu0 %v5202_v33  ;;  %2891 = vmatprep.subr.bf16.mxu1 %v5203_v3  ;;  %v5208_v33 = vpack.c.bf16 %v3670_v1, %v5207_v31  ;;  %v5209_v3 = vpack.c.bf16 %v3677_v37, %v3673_v22  ;;  %v5214_v37 = vpack.c.bf16 %v5112_v61, %v5085_v16  ;;  %v5230_v47 = vld [vmem:[#allocation90_spill] sm:$0xff]  ;;  %v5239_v46 = vld [vmem:[#allocation36_spill] sm:$0xff]  ;;  %v5246_v8 = vld [vmem:[#allocation43_spill] sm:$0xff] }
 0x121   : > { %999 = vmatprep.mubr.f32.mxu0 %v5190_v2  ;;  %1903 = vmatprep.mubr.f32.mxu1 %v5190_v2  ;;  %v5216_v59 = vpack.c.bf16 %v5089_v26, %v5215_v58  ;;  %v5219_v1 = vpack.c.bf16 %v5115_v27, %v5092_v48  ;;  %v5220_v22 = vpack.c.bf16 %v5095_v20, %v5094_v28  ;;  %v5226_v20 = vld [vmem:[#allocation88_spill] sm:$0xff]  ;;  %v5233_v48 = vld [vmem:[#allocation22_spill] sm:$0xff]  ;;  %v5240_v27 = vld [vmem:[#allocation37_spill] sm:$0xff] }
 0x122   : > { %v5221_v26 = vpack.c.bf16 %v3760_v34, %v5096_v9  ;;  %v5225_v28 = vpack.c.bf16 %v5123_v41, %v5122_v40  ;;  %v5228_v34 = vpack.c.bf16 %v5226_v20, %v5227_v52  ;;  %v5231_v16 = vpack.c.bf16 %v5229_v24, %v5230_v47  ;;  %v5234_v9 = vld [vmem:[#allocation93_spill] sm:$0xff]  ;;  %v5236_v40 = vld [vmem:[#allocation27_spill] sm:$0xff]  ;;  %v5241_v61 = vld [vmem:[#allocation38_spill] sm:$0xff] }
 0x123   : > { %2701 = vmatpush1.bf16.msra.mxu0 %v5204_v39  ;;  %2893 = vmatpush1.bf16.msra.mxu1 %v5205_v25  ;;  %v5238_v41 = vld [vmem:[#allocation33_spill] sm:$0xff]  ;;  %v5245_v13 = vld [vmem:[#allocation42_spill] sm:$0xff]  ;;  %v5249_v39 = vld [vmem:[#allocation47_spill] sm:$0xff] }
 0x124   : > { %2703 = vmatprep.subr.bf16.mxu0 %v5206_v49  ;;  %2895 = vmatprep.subr.bf16.mxu1 %v5208_v33  ;;  %v5250_v25 = vld [vmem:[#allocation49_spill] sm:$0xff]  ;;  %v5251_v49 = vld [vmem:[#allocation51_spill] sm:$0xff]  ;;  %v5252_v31 = vld [vmem:[#allocation54_spill] sm:$0xff] }
 0x125   : > { %v5253_v33 = vld [vmem:[#allocation57_spill] sm:$0xff]  ;;  %v5259_v58 = vld [vmem:[#allocation74_spill] sm:$0xff]  ;;  %v5269_v20 = vld [vmem:[#allocation23_spill] sm:$0xff] }
 0x126   : > { %v5270_v52 = vand.u32 4294901760, %v5269_v20  ;;  %v5271_v24 = vld [vmem:[#allocation86_spill] sm:$0xff]  ;;  %v5272_v47 = vld [vmem:[#allocation89_spill] sm:$0xff]  ;;  %v5280_v20 = vand.u32 4294901760, %v5198_v38  ;;  %v5286_v38 = vand.u32 4294901760, %v3631_v7 }
 0x127   : > { %2705 = vmatpush1.bf16.msra.mxu0 %v5209_v3  ;;  %2897 = vmatpush1.bf16.msra.mxu1 %v5210_v0  ;;  %v5247_v0 = vld [vmem:[#allocation45_spill] sm:$0xff] }
 0x128   : > { %2707 = vmatprep.subr.bf16.mxu0 %v5211_v45  ;;  %2899 = vmatprep.subr.bf16.mxu1 %v5212_v50  ;;  %v5254_v3 = vld [vmem:[#allocation61_spill] sm:$0xff]  ;;  %v5255_v45 = vld [vmem:[#allocation63_spill] sm:$0xff]  ;;  %v5256_v50 = vld [vmem:[#allocation66_spill] sm:$0xff] }
 0x12b   : > { %2709 = vmatpush1.bf16.msra.mxu0 %v5213_v54  ;;  %2901 = vmatpush1.bf16.msra.mxu1 %v5214_v37  ;;  %v5257_v54 = vld [vmem:[#allocation69_spill] sm:$0xff] }
 0x12c   : > { %2711 = vmatprep.subr.bf16.mxu0 %v5216_v59  ;;  %2903 = vmatprep.subr.bf16.mxu1 %v5217_v4  ;;  %v5258_v37 = vld [vmem:[#allocation73_spill] sm:$0xff]  ;;  %v5261_v4 = vld [vmem:[#allocation80_spill] sm:$0xff] }
 0x12d   : > { %v5260_v59 = vld [vmem:[#allocation77_spill] sm:$0xff] }
 0x12f   : > { %2713 = vmatpush1.bf16.msra.mxu0 %v5218_v6  ;;  %2905 = vmatpush1.bf16.msra.mxu1 %v5219_v1  ;;  %v5262_v6 = vld [vmem:[#allocation84_spill] sm:$0xff]  ;;  %v5263_v1 = vld [vmem:[#allocation19_spill] sm:$0xff] }
 0x130   : > { %2715 = vmatprep.subr.bf16.mxu0 %v5220_v22  ;;  %2907 = vmatprep.subr.bf16.mxu1 %v5221_v26  ;;  %v5264_v22 = vand.u32 4294901760, %v5263_v1  ;;  %v5265_v26 = vld [vmem:[#allocation20_spill] sm:$0xff]  ;;  %v5276_v1 = vand.u32 4294901760, %v5194_v17  ;;  %v5282_v17 = vand.u32 4294901760, %v3615_v53 }
 0x133   : > { %2717 = vmatpush1.bf16.msra.mxu0 %v5222_v32  ;;  %2909 = vmatpush1.bf16.msra.mxu1 %v5223_v23  ;;  %v5266_v32 = vand.u32 4294901760, %v5265_v26 }
 0x134   : > { %2719 = vmatprep.subr.bf16.mxu0 %v5224_v29  ;;  %2911 = vmatprep.subr.bf16.mxu1 %v5225_v28  ;;  %v5267_v29 = vld [vmem:[#allocation21_spill] sm:$0xff] }
 0x135   : > { %v2754_v23 = vpack.c.bf16 %v5266_v32, %v5264_v22  ;;  %v5268_v28 = vand.u32 4294901760, %v5267_v29  ;;  %v5277_v22 = vand.u32 4294901760, %v5195_v60  ;;  %v5278_v32 = vand.u32 4294901760, %v5196_v19 }
 0x136   : > { %v5284_v60 = vand.u32 4294901760, %v3623_v63  ;;  %v5285_v19 = vand.u32 4294901760, %v3627_v5  ;;  %v5291_v63 = vand.u32 4294901760, %v3647_v35  ;;  %v5292_v5 = vand.u32 4294901760, %v3649_v36  ;;  %v5298_v35 = vld [vmem:[#allocation59_spill] sm:$0xff]  ;;  %v5299_v36 = vld [vmem:[#allocation60_spill] sm:$0xff] }
 0x137   : > { %2721 = vmatpush1.bf16.msra.mxu0 %v5228_v34  ;;  %2913 = vmatpush1.bf16.msra.mxu1 %v5231_v16  ;;  %v2946_v34 = vpack.c.bf16 %v5270_v52, %v5268_v28  ;;  %v5273_v16 = vand.u32 4294901760, %v5191_v43  ;;  %v2758_v29 = vpack.c.bf16 %v5278_v32, %v5277_v22  ;;  %v5279_v28 = vand.u32 4294901760, %v5197_v55  ;;  %v5281_v52 = vld [vmem:[#allocation94_spill] sm:$0xff]  ;;  %v5302_v22 = vld [vmem:[#allocation71_spill] sm:$0xff]  ;;  %v5303_v32 = vld [vmem:[#allocation72_spill] sm:$0xff] }
 0x138   : > { %2723 = vmatprep.subr.bf16.mxu0 %v5232_v21  ;;  %2915 = vmatprep.subr.bf16.mxu1 %v5233_v48  ;;  %v5287_v55 = vand.u32 4294901760, %v3634_v12  ;;  %v2764_v7 = vpack.c.bf16 %v5292_v5, %v5291_v63  ;;  %v5293_v12 = vld [vmem:[#allocation48_spill] sm:$0xff] }
 0x139   : > { %v2950_v43 = vpack.c.bf16 %v5280_v20, %v5279_v28  ;;  %v5305_v28 = vld [vmem:[#allocation62_spill] sm:$0xff]  ;;  %v5306_v20 = vld [vmem:[#allocation64_spill] sm:$0xff] }
 0x13a   : > { %1002 = vmatmul.mubr.f32.vlgmr.msra.gmra.mrb[0].mxu0 %v5234_v9  ;;  %1906 = vmatmul.mubr.f32.vlgmr.msra.gmra.mrb[0].mxu1 %v5234_v9  ;;  %v5274_v9 = vand.u32 4294901760, %v5192_v42 }
 0x13b   : > { %2725 = vmatpush1.bf16.msra.mxu0 %v5235_v44  ;;  %2917 = vmatpush1.bf16.msra.mxu1 %v5236_v40 }
 0x13c   : > { %2727 = vmatprep.subr.bf16.mxu0 %v5237_v56  ;;  %2919 = vmatprep.subr.bf16.mxu1 %v5238_v41 }
 0x13d   : > { %1007 = vmatprep.mubr.f32.mxu0 %v5190_v2  ;;  %1911 = vmatprep.mubr.f32.mxu1 %v5190_v2 }
 0x13e   : > { %1010 = vmatmul.mubr.f32.gmra.mrb[2].mxu0 %v4422_v30  ;;  %1914 = vmatmul.mubr.f32.gmra.mrb[2].mxu1 %v4422_v30  ;;  %v5248_v30 = vld [vmem:[#allocation46_spill] sm:$0xff] }
 0x13f   : > { %2729 = vmatpush1.bf16.msra.mxu0 %v5239_v46  ;;  %2921 = vmatpush1.bf16.msra.mxu1 %v5240_v27 }
 0x140   : > { %2731 = vmatprep.subr.bf16.mxu0 %v5241_v61  ;;  %2923 = vmatprep.subr.bf16.mxu1 %v5242_v51 }
 0x141   : > { %1112 = vmatprep.mubr.f32.mxu0 %v5190_v2  ;;  %2016 = vmatprep.mubr.f32.mxu1 %v5190_v2 }
 0x143   : > { %2733 = vmatpush1.bf16.msra.mxu0 %v5243_v57  ;;  %2925 = vmatpush1.bf16.msra.mxu1 %v5244_v10 }
 0x144   : > { %2735 = vmatprep.subr.bf16.mxu0 %v5245_v13  ;;  %2927 = vmatprep.subr.bf16.mxu1 %v5246_v8 }
 0x147   : > { %2737 = vmatpush1.bf16.msra.mxu0 %v5247_v0  ;;  %2929 = vmatpush1.bf16.msra.mxu1 %v5248_v30 }
 0x148   : > { %2739 = vmatprep.subr.bf16.mxu0 %v5249_v39  ;;  %2931 = vmatprep.subr.bf16.mxu1 %v5250_v25 }
 0x14b   : > { %2741 = vmatpush1.bf16.msra.mxu0 %v5251_v49  ;;  %2933 = vmatpush1.bf16.msra.mxu1 %v5252_v31 }
 0x14c   : > { %2743 = vmatprep.subr.bf16.mxu0 %v5253_v33  ;;  %2935 = vmatprep.subr.bf16.mxu1 %v5254_v3 }
 0x14f   : > { %2745 = vmatpush1.bf16.msra.mxu0 %v5255_v45  ;;  %2937 = vmatpush1.bf16.msra.mxu1 %v5256_v50 }
 0x150   : > { %2747 = vmatprep.subr.bf16.mxu0 %v5257_v54  ;;  %2939 = vmatprep.subr.bf16.mxu1 %v5258_v37 }
 0x153   : > { %2749 = vmatpush1.bf16.msra.mxu0 %v5259_v58  ;;  %2941 = vmatpush1.bf16.msra.mxu1 %v5260_v59 }
 0x154   : > { %2751 = vmatprep.subr.bf16.mxu0 %v5261_v4  ;;  %2943 = vmatprep.subr.bf16.mxu1 %v5262_v6  ;;  %v2756_v4 = vpack.c.bf16 %v5274_v9, %v5273_v16  ;;  %v5275_v6 = vand.u32 4294901760, %v5193_v18  ;;  %v5283_v18 = vand.u32 4294901760, %v3621_v62  ;;  %v5290_v62 = vld [vmem:[#allocation83_spill] sm:$0xff]  ;;  %v5296_v16 = vld [vmem:[#allocation53_spill] sm:$0xff] }
 0x155   : > { %v5297_v9 = vld [vmem:[#allocation55_spill] sm:$0xff] }
 0x156   : > { %v2948_v26 = vpack.c.bf16 %v5276_v1, %v5275_v6  ;;  %v2760_v42 = vpack.c.bf16 %v5283_v18, %v5282_v17  ;;  %v2952_v6 = vpack.c.bf16 %v5285_v19, %v5284_v60  ;;  %v5300_v1 = vld [vmem:[#allocation65_spill] sm:$0xff]  ;;  %v5309_v17 = vld [vmem:[#allocation76_spill] sm:$0xff]  ;;  %v5310_v18 = vld [vmem:[#allocation78_spill] sm:$0xff] }
 0x157   : > { %2753 = vmatpush1.bf16.msra.mxu0 %v5271_v24  ;;  %2945 = vmatpush1.bf16.msra.mxu1 %v5272_v47  ;;  %v5312_v60 = vld [vmem:[#allocation81_spill] sm:$0xff]  ;;  %v5313_v19 = vld [vmem:[#allocation82_spill] sm:$0xff] }
 0x158   : > { %2755 = vmatprep.subr.bf16.mxu0 %v2754_v23  ;;  %2947 = vmatprep.subr.bf16.mxu1 %v2946_v34  ;;  %v2762_v23 = vpack.c.bf16 %v5287_v55, %v5286_v38  ;;  %v5289_v34 = vand.u32 4294901760, %v3640_v15  ;;  %v5295_v15 = vld [vmem:[#allocation52_spill] sm:$0xff] }
 0x15a   : > { %1116 = vmatmul.mubr.f32.vlgmr.msra.gmra.mrb[0].mxu0 %v5281_v52  ;;  %2020 = vmatmul.mubr.f32.vlgmr.msra.gmra.mrb[0].mxu1 %v5281_v52  ;;  %v5308_v52 = vld [vmem:[#allocation75_spill] sm:$0xff] }
 0x15b   : > { %2757 = vmatpush1.bf16.msra.mxu0 %v2756_v4  ;;  %2949 = vmatpush1.bf16.msra.mxu1 %v2948_v26  ;;  %v5288_v4 = vand.u32 4294901760, %v3638_v14  ;;  %v5294_v14 = vld [vmem:[#allocation50_spill] sm:$0xff]  ;;  %v5301_v26 = vld [vmem:[#allocation67_spill] sm:$0xff] }
 0x15c   : > { %2759 = vmatprep.subr.bf16.mxu0 %v2758_v29  ;;  %2951 = vmatprep.subr.bf16.mxu1 %v2950_v43  ;;  %v5304_v29 = vld [vmem:[#allocation56_spill] sm:$0xff] }
 0x15d   : > { %v2954_v53 = vpack.c.bf16 %v5289_v34, %v5288_v4  ;;  %1121 = vmatprep.mubr.f32.mxu0 %v5190_v2  ;;  %2025 = vmatprep.mubr.f32.mxu1 %v5190_v2  ;;  %v5307_v43 = vld [vmem:[#allocation68_spill] sm:$0xff] }
 0x15e   : > { %1125 = vmatmul.mubr.f32.gmra.mrb[2].mxu0 %v5290_v62  ;;  %2029 = vmatmul.mubr.f32.gmra.mrb[2].mxu1 %v5290_v62 }
 0x15f   : > { %2761 = vmatpush1.bf16.msra.mxu0 %v2760_v42  ;;  %2953 = vmatpush1.bf16.msra.mxu1 %v2952_v6  ;;  %v5311_v42 = vld [vmem:[#allocation79_spill] sm:$0xff]  ;;  %v5314_v6 = vld [vmem:[#allocation70_spill] sm:$0xff] }
 0x160   : > { %2763 = vmatprep.subr.bf16.mxu0 %v2762_v23  ;;  %2955 = vmatprep.subr.bf16.mxu1 %v2954_v53 }
 0x161   : > { %1291 = vmatprep.mubr.f32.mxu0 %v5190_v2  ;;  %2195 = vmatprep.mubr.f32.mxu1 %v5190_v2 }
 0x163   : > { %2765 = vmatpush1.bf16.msra.mxu0 %v2764_v7  ;;  %2957 = vmatpush1.bf16.msra.mxu1 %v5293_v12 }
 0x164   : > { %2767 = vmatprep.subr.bf16.mxu0 %v5294_v14  ;;  %2959 = vmatprep.subr.bf16.mxu1 %v5295_v15 }
 0x167   : > { %2769 = vmatpush1.bf16.msra.mxu0 %v5296_v16  ;;  %2961 = vmatpush1.bf16.msra.mxu1 %v5297_v9 }
 0x168   : > { %2771 = vmatprep.subr.bf16.mxu0 %v5298_v35  ;;  %2963 = vmatprep.subr.bf16.mxu1 %v5299_v36 }
 0x16b   : > { %2773 = vmatpush1.bf16.msra.mxu0 %v5300_v1  ;;  %2965 = vmatpush1.bf16.msra.mxu1 %v5301_v26 }
 0x16c   : > { %2775 = vmatprep.subr.bf16.mxu0 %v5302_v22  ;;  %2967 = vmatprep.subr.bf16.mxu1 %v5303_v32 }
 0x16f   : > { %2777 = vmatpush1.bf16.msra.mxu0 %v5304_v29  ;;  %2969 = vmatpush1.bf16.msra.mxu1 %v5305_v28 }
 0x170   : > { %2779 = vmatprep.subr.bf16.mxu0 %v5306_v20  ;;  %2971 = vmatprep.subr.bf16.mxu1 %v5307_v43 }
 0x173   : > { %2781 = vmatpush1.bf16.msra.mxu0 %v5308_v52  ;;  %2973 = vmatpush1.bf16.msra.mxu1 %v5309_v17 }
 0x174   : > { %2783 = vmatprep.subr.bf16.mxu0 %v5310_v18  ;;  %2975 = vmatprep.subr.bf16.mxu1 %v5311_v42 }
 0x177   : > { %2785 = vmatpush1.bf16.msra.mxu0 %v5312_v60  ;;  %2977 = vmatpush1.bf16.msra.mxu1 %v5313_v19 }
 0x178   : > { %2787 = vmatprep.subr.bf16.mxu0 %v5232_v21  ;;  %2979 = vmatprep.subr.bf16.mxu1 %v5233_v48  ;;  %v5315_v21 = vld [vmem:[#allocation80_spill] sm:$0xff] }
 0x179   : > { %v5316_v48 = vld [vmem:[#allocation84_spill] sm:$0xff] }
 0x17a   : > { %1293 = vmatmul.mubr.f32.vlgmr.msra.gmra.mrb[0].mxu0 %v5199_v11  ;;  %2197 = vmatmul.mubr.f32.vlgmr.msra.gmra.mrb[0].mxu1 %v5199_v11 }
 0x17b   : > { %2789 = vmatpush1.bf16.msra.mxu0 %v5235_v44  ;;  %2981 = vmatpush1.bf16.msra.mxu1 %v5236_v40  ;;  %v3342_v44 = vmov 1983009808  }
 0x17c   : > { %2791 = vmatprep.subr.bf16.mxu0 %v5237_v56  ;;  %2983 = vmatprep.subr.bf16.mxu1 %v5238_v41  ;;  %v2328_v40 = vunpack.c.l.s4 %v3342_v44  ;;  %v2330_v56 = vlaneseq }
 0x17d   : > { %1298 = vmatprep.mubr.f32.mxu0 %v5190_v2  ;;  %2202 = vmatprep.mubr.f32.mxu1 %v5190_v2 }
 0x17e   : > { %1300 = vmatmul.mubr.f32.gmra.mrb[2].mxu0 %v5314_v6  ;;  %2204 = vmatmul.mubr.f32.gmra.mrb[2].mxu1 %v5314_v6  ;;  %v2329_v41 = vunpack.c.0.s8 %v2328_v40 }
 0x17f   : > { %2793 = vmatpush1.bf16.msra.mxu0 %v5239_v46  ;;  %2985 = vmatpush1.bf16.msra.mxu1 %v5240_v27  ;;  %v2331_v46 = vshrl.u32 %v2330_v56, 7 }
 0x180   : > { %2795 = vmatprep.subr.bf16.mxu0 %v5241_v61  ;;  %2987 = vmatprep.subr.bf16.mxu1 %v5242_v51 }
 0x181   : > { %1402 = vmatprep.mubr.f32.mxu0 %v5190_v2  ;;  %2306 = vmatprep.mubr.f32.mxu1 %v5190_v2  ;;  %v2332_v51 = vsub.s32 %v2329_v41, %v2331_v46 }
 0x183   : > { %2797 = vmatpush1.bf16.msra.mxu0 %v5243_v57  ;;  %2989 = vmatpush1.bf16.msra.mxu1 %v5244_v10 }
 0x184   : > { %2799 = vmatprep.subr.bf16.mxu0 %v5245_v13  ;;  %2991 = vmatprep.subr.bf16.mxu1 %v5246_v8 }
 0x187   : > { %2801 = vmatpush1.bf16.msra.mxu0 %v5247_v0  ;;  %2993 = vmatpush1.bf16.msra.mxu1 %v5248_v30 }
 0x188   : > { %2803 = vmatprep.subr.bf16.mxu0 %v5249_v39  ;;  %2995 = vmatprep.subr.bf16.mxu1 %v5250_v25 }
 0x18b   : > { %2805 = vmatpush1.bf16.msra.mxu0 %v5251_v49  ;;  %2997 = vmatpush1.bf16.msra.mxu1 %v5252_v31 }
 0x18c   : > { %2807 = vmatprep.subr.bf16.mxu0 %v5253_v33  ;;  %2999 = vmatprep.subr.bf16.mxu1 %v5254_v3 }
 0x18f   : > { %2809 = vmatpush1.bf16.msra.mxu0 %v5255_v45  ;;  %3001 = vmatpush1.bf16.msra.mxu1 %v5256_v50 }
 0x190   : > { %2811 = vmatprep.subr.bf16.mxu0 %v5257_v54  ;;  %3003 = vmatprep.subr.bf16.mxu1 %v5258_v37 }
 0x193   : > { %2813 = vmatpush1.bf16.msra.mxu0 %v5259_v58  ;;  %3005 = vmatpush1.bf16.msra.mxu1 %v5260_v59 }
 0x194   : > { %2815 = vmatprep.subr.bf16.mxu0 %v5315_v21  ;;  %3007 = vmatprep.subr.bf16.mxu1 %v5316_v48 }
 0x197   : > { %2817 = vmatpush1.bf16.msra.mxu0 %v5271_v24  ;;  %3009 = vmatpush1.bf16.msra.mxu1 %v5272_v47 }
 0x19a   : > { %1404 = vmatmul.mubr.f32.vlgmr.msra.gmra.mrb[0].mxu0 %v5199_v11  ;;  %2308 = vmatmul.mubr.f32.vlgmr.msra.gmra.mrb[0].mxu1 %v5199_v11 }
 0x19b   : > { %1409 = vmatprep.mubr.f32.mxu0 %v5190_v2  ;;  %2313 = vmatprep.mubr.f32.mxu1 %v5190_v2 }
 0x19e   : > { %1411 = vmatmul.mubr.f32.gmra.mrb[2].mxu0 %v5314_v6  ;;  %2315 = vmatmul.mubr.f32.gmra.mrb[2].mxu1 %v5314_v6 }
 0x26d   : > { %v1405_v27 = vpop.f32.mrb[0].mxu0  ;;  %v2309_v61 = vpop.f32.mrb[0].mxu1 }
 0x26e   : > { %v1407_v57 = vpop.f32.mrb[1].mxu0  ;;  %v2311_v10 = vpop.f32.mrb[1].mxu1 }
 0x26f   : > { %v2325_v11 = vcombine.low %v1405_v27, %v1407_v57  ;;  %v2348_v13 = vcombine.high %v1405_v27, %v1407_v57  ;;  %v2326_v8 = vcombine.low %v2309_v61, %v2311_v10  ;;  %v2349_v0 = vcombine.high %v2309_v61, %v2311_v10 }
 0x271   : > { %v2333_v2 = vrot.slane %v2325_v11, %v2332_v51  ;;  %v2356_v30 = vrot.slane %v2348_v13, %v2332_v51  ;;  %v2340_v39 = vrot.slane %v2326_v8, %v2332_v51  ;;  %v2363_v25 = vrot.slane %v2349_v0, %v2332_v51  ;;  %v1412_v49 = vpop.f32.mrb[2].mxu0  ;;  %v2316_v31 = vpop.f32.mrb[2].mxu1 }
 0x272   : > { %v1414_v33 = vpop.f32.mrb[3].mxu0  ;;  %v2318_v3 = vpop.f32.mrb[3].mxu1 }
 0x273   : > { %v2341_v45 = vcombine.low %v2333_v2, %v2340_v39  ;;  %v2344_v50 = vcombine.high %v2333_v2, %v2340_v39  ;;  %v2364_v54 = vcombine.low %v2356_v30, %v2363_v25  ;;  %v2368_v37 = vcombine.high %v2356_v30, %v2363_v25 }
 0x274   : > { %v2376_v58 = vcombine.low %v1412_v49, %v1414_v33  ;;  %v2400_v59 = vcombine.high %v1412_v49, %v1414_v33  ;;  %v2377_v24 = vcombine.low %v2316_v31, %v2318_v3  ;;  %v2401_v47 = vcombine.high %v2316_v31, %v2318_v3 }
 0x275   : > { %2343 = vst [vmem:[%s274_s5] sm:$0xff] %v2341_v45  ;;  %2612 = vst [vmem:[%s274_s5 + $0x8] sm:$0xff] %v2344_v50 }
 0x276   : > { %2613 = vst [vmem:[%s274_s5 + $0x10] sm:$0xff] %v2364_v54  ;;  %2614 = vst [vmem:[%s274_s5 + $0x18] sm:$0xff] %v2368_v37  ;;  %v2384_v38 = vrot.slane %v2376_v58, %v2332_v51  ;;  %v2408_v55 = vrot.slane %v2400_v59, %v2332_v51  ;;  %v2391_v23 = vrot.slane %v2377_v24, %v2332_v51 }
 0x277   : > { %v2415_v4 = vrot.slane %v2401_v47, %v2332_v51 }
 0x278   : > { %v2392_v34 = vcombine.low %v2384_v38, %v2391_v23  ;;  %v2396_v53 = vcombine.high %v2384_v38, %v2391_v23 }
 0x279   : > { %v2416_v62 = vcombine.low %v2408_v55, %v2415_v4  ;;  %v2420_v63 = vcombine.high %v2408_v55, %v2415_v4 }
 0x27a   : > { %2615 = vst [vmem:[%s274_s5 + $0x20] sm:$0xff] %v2392_v34  ;;  %2616 = vst [vmem:[%s274_s5 + $0x28] sm:$0xff] %v2396_v53 }
 0x27b   : > { %2617 = vst [vmem:[%s274_s5 + $0x30] sm:$0xff] %v2416_v62  ;;  %2618 = vst [vmem:[%s274_s5 + $0x38] sm:$0xff] %v2420_v63 }
 0x27c   : > { %3251 = shalt.err (!%p3248_p10)
}
 0x27d   : > { %s3252_s12 = scalar_lea.hbm %s4719_s25, 1024  ;;  %s3256_s27 = scalar_lea.hbm %s4774_s4, 2048 }
 0x27e   : > { %p3253_p0 = scmp.ne.s32.totalorder %s4719_s25, %s3252_s12  ;;  %p3257_p7 = scmp.lt.u32.totalorder %s4719_s25, %s4774_s4 }
 0x27f   : > { %p3258_p12 = scmp.lt.u32.totalorder %s3256_s27, %s3252_s12  ;;  %p3260_p1 = scmp.lt.u32.totalorder %s3252_s12, %s4719_s25 }
 0x280   : > { %p3254_p13 = pnand %p3253_p0, %p3491_p2 }
 0x281   : > { %p3259_p11 = por %p3258_p12, %p3257_p7 }
 0x282   : > { %p3255_p9 = pneg %p3254_p13 }
 0x283   : > { %p3261_p6 = por %p3260_p1, %p3259_p11 }
 0x285   : > { %p3262_p4 = pnand %p3261_p6, %p3255_p9 }
 0x287   : > { %3265 = shalt.err (!%p3262_p4)
}
 0x288   : > { %s3344_s5 = smov 128   ;;  %s3345_s8 = smov 8  }
 0x289   : > { %3064 = dma.vmem_to_hbm [thread:$0]  (%p3491_p2), %s4721_s6, 1024, %s4719_s25, %s2425_s18, %s3344_s5, %s3344_s5, %s3345_s8  }
 0x28a PF: > { %s2455_s23 = sand.u32 1, %s3312_s15   ;;  %p5317_p8 = scmp.ne.s32.totalorder %s4993_s26, 0 }
 0x28b   : > { %p5318_p3 = scmp.ge.s32.totalorder %s3332_s20, 2  ;;  %s2456_s30 = scalar_lea.sflag [#allocation5], %s2455_s23 }
 0x28d   : > { %p3081_p5 = pnand %p5318_p3, %p5317_p8 }
 0x28f   : > { %3307 = dma.done.wait (!%p3081_p5), %s2456_s30, 1024  }
 0x290   : > { %3309 = vsyncadd (!%p3081_p5), %s2456_s30, 4294966272  ;;  %s23_s20 = sadd.s32 1, %s3332_s20   ;;  %s5319_s15 = smov %s3316_s16 }
 0x291   : > { %p20_p10 = scmp.ge.s32.totalorder %s23_s20, 4   ;;  %s5320_s16 = smov %s3320_s17 }
 0x292   : > { %s5321_s17 = smov %s3503_s29  ;;  %s5322_s18 = smov %s3328_s19 }
 0x293   : > { %s5323_s19 = smov %s5325_s21  ;;  %22 = sbr.rel (!%p20_p10) target bundleno = 9 (0x9), region = 101 }
 0x29a   :  { %2461 = vsyncpa [#allocation4], 1 }
 0x29b   :  { %2463 = vsyncpa [#allocation4 + $0x1], 1 }
 0x29c   :  { %2464 = vsyncpa [#allocation11], 1 }
 0x29d   :  { %2465 = vsyncpa [#allocation5], 1 }
 0x29e   :  { %2467 = vsyncpa [#allocation5 + $0x1], 1 }
 0x29f   :  { %2468 = vsyncpa [#allocation6], 1 }
 0x2a0   :  { %2470 = vsyncpa [#allocation6 + $0x1], 1 }
 0x2a1   :  { %2471 = vsyncpa [#allocation9], 1 }

</bundles_post_ra>
